<compile_context>
chip_gen: v7x
topology: tpu7x:2x2x1
jax: 0.10.0
libtpu: 0.0.40
codegen_flags: <defaults>
</compile_context>

<pallas_src>
import functools

import jax
import jax.numpy as jnp
from jax import lax
from jax.experimental import pallas as pl
from jax.experimental.pallas import tpu as pltpu


SB = 128   # batch rows per inner step == one full lane group (lane-dense output)
FB = 128   # feature rows per MXU chunk (keeps the f32 intermediate ~16 vregs)


def _round_up(x, m):
    return ((x + m - 1) // m) * m


def angle_cnn_kernel(x_ref, wT_ref, bb_ref, wf_ref, beff_ref, o_ref, *, nsb, nfb):
    """One grid step = TN = nsb*SB batch rows.

    x_ref   : (TN, CHW)    f32 inputs, torch NCHW flatten order (no pad/cast)
    wT_ref  : (F, CHW)     folded 1x1-conv weight, transposed (feature-major)
    bb_ref  : (F, SB)      conv1 bias per feature, pre-broadcast over SB lanes
    wf_ref  : (F, SB)      conv2 + Flatten + Linear fused reduction weight
    beff_ref: (1, 1) SMEM  fused scalar bias
    o_ref   : (1, nsb, SB) f32 outputs (one full 128-lane row per sub-block)
    """
    beff = beff_ref[0, 0]
    cdt = wT_ref.dtype

    def body(i, carry):
        row0 = pl.multiple_of(i * SB, SB)
        xs = x_ref[pl.ds(row0, SB), :].astype(cdt)            # (SB, CHW)
        s = jnp.zeros((SB,), jnp.float32)
        for fc in range(nfb):                                 # static feature chunks
            f0 = fc * FB
            # ht[f, n] = sum_c wT[f, c] * xs[n, c]: features on sublanes, batch on
            # lanes (standard q @ k^T contraction pattern -> MXU, f32 accumulate).
            ht = lax.dot_general(
                wT_ref[pl.ds(f0, FB), :], xs,
                (((1,), (1,)), ((), ())),
                preferred_element_type=jnp.float32)           # (FB, SB) f32
            ht = jnp.maximum(ht + bb_ref[pl.ds(f0, FB), :], 0.0)   # bias + ReLU
            # Weighted feature reduction over SUBLANES: mostly VALU vreg adds plus a
            # tiny sublane tree, instead of a 256-lane XLU rotate tree per 8 rows.
            s = s + jnp.sum(ht * wf_ref[pl.ds(f0, FB), :], axis=0)  # (SB,) on lanes
        o_ref[0, i, :] = s + beff                              # natively lane-dense
        return carry

    lax.fori_loop(0, nsb, body, 0, unroll=True)


def angle_cnn_2d(x_nchw, torch_params, *, block_n=8192, compute_dtype=jnp.float32):
    """Forward pass of Angle_CNN_2D.

    x_nchw: (N, C, H, W) float32.  Returns (N, 1) float32.
    torch_params: (w1_t (hid,C), b1 (hid,), w2_t (hid,hid), b2 (hid,),
                   fc_w (hid*H*W,), fc_b (1,)) in PyTorch layout.
    block_n: batch rows per grid step (rounded to 128).  Default 8192 keeps the
             per-tile VMEM at ~10 MiB (safe on v7x's 64 MiB as well).
    compute_dtype: matmul operand dtype; bf16 casts x in-kernel (f32 accumulate,
             f32 epilogue); f32 is bit-faithful to the reference.
    """
    w1_t, b1, w2_t, b2, fc_w, fc_b = torch_params
    N, C, H, W = x_nchw.shape
    HW = H * W
    hid = w1_t.shape[0]
    assert HW == hid, "Linear(hidden_dim*hidden_dim, 1) requires H*W == hidden_dim"
    CHW = C * HW
    F = HW * hid
    assert F % FB == 0

    # ---- one-time parameter folding (tiny constants, plain XLA) --------------
    # wbigT[r*hid + k, c*HW + s] = w1[c -> k] * delta(r, s): absorbs the 1x1 conv
    # and the NCHW flatten permutation; x only needs a layout-free reshape.
    w1_ck = w1_t.T.astype(jnp.float32)                            # (C, hid)
    eye_r = jnp.eye(HW, dtype=jnp.float32)
    wbigT = jnp.einsum('rs,ck->rkcs', eye_r, w1_ck).reshape(F, CHW)
    bbig = jnp.tile(b1.astype(jnp.float32), HW)                   # (F,) -> b1[k]
    # conv2 + Flatten + Linear fused: out = sum_f relu(z_f) * weff_f + beff
    fc2d = fc_w.reshape(hid, HW).astype(jnp.float32)              # fc2d[j, r]
    weff = (fc2d.T @ w2_t.astype(jnp.float32)).reshape(F)         # [r*hid + k]
    beff = (fc_b[0] + jnp.sum(b2.astype(jnp.float32)[:, None] * fc2d))
    beff = beff.reshape(1, 1).astype(jnp.float32)

    wbigT = wbigT.astype(compute_dtype)
    bbig_f = jnp.broadcast_to(bbig[:, None], (F, SB)).astype(jnp.float32)
    weff_f = jnp.broadcast_to(weff[:, None], (F, SB)).astype(jnp.float32)

    # ---- tiling: TN rows per grid step, ragged tail handled in the kernel ----
    TN = min(_round_up(block_n, SB), _round_up(N, SB))
    nsb = TN // SB
    num_tiles = pl.cdiv(N, TN)        # last tile may be partial (no wrapper pad)
    nfb = F // FB

    x_flat = x_nchw.reshape(N, CHW)   # free reshape; NO pad, NO dtype cast

    kernel = functools.partial(angle_cnn_kernel, nsb=nsb, nfb=nfb)

    out = pl.pallas_call(
        kernel,
        out_shape=jax.ShapeDtypeStruct((num_tiles, nsb, SB), jnp.float32),
        grid_spec=pltpu.PrefetchScalarGridSpec(
            num_scalar_prefetch=0,
            grid=(num_tiles,),
            in_specs=[
                pl.BlockSpec((TN, CHW), lambda t: (t, 0)),          # x tile
                pl.BlockSpec((F, CHW), lambda t: (0, 0)),           # wbigT (resident)
                pl.BlockSpec((F, SB), lambda t: (0, 0)),            # bias (resident)
                pl.BlockSpec((F, SB), lambda t: (0, 0)),            # weff (resident)
                pl.BlockSpec(memory_space=pltpu.MemorySpace.SMEM),  # beff scalar
            ],
            out_specs=pl.BlockSpec((1, nsb, SB), lambda t: (t, 0, 0)),
        ),
        compiler_params=pltpu.CompilerParams(
            dimension_semantics=("parallel",),    # megacore sharding hint (v7x)
            vmem_limit_bytes=32 * 1024 * 1024),
    )(x_flat, wbigT, bbig_f, weff_f, beff)

    # Garbage rows of the partial last tile are dropped here (free for small N*4B).
    return out.reshape(num_tiles * TN)[:N, None]


def make_params(key, in_channels, hidden_dim, H, W):
    """Deterministic synthetic parameters in PyTorch layout/shapes."""
    HW = H * W
    k1, k2, k3, k4, k5, k6 = jax.random.split(key, 6)
    w1_t = jax.random.normal(k1, (hidden_dim, in_channels), jnp.float32) * 0.1
    b1 = jax.random.normal(k2, (hidden_dim,), jnp.float32) * 0.1
    w2_t = jax.random.normal(k3, (hidden_dim, hidden_dim), jnp.float32) * 0.1
    b2 = jax.random.normal(k4, (hidden_dim,), jnp.float32) * 0.1
    fc_w = jax.random.normal(k5, (hidden_dim * HW,), jnp.float32) * 0.05
    fc_b = jax.random.normal(k6, (1,), jnp.float32) * 0.05
    return (w1_t, b1, w2_t, b2, fc_w, fc_b)


def reference_forward(x_nchw, torch_params):
    """Pure-JAX reference with exact PyTorch semantics (NCHW, torch Flatten order)."""
    w1_t, b1, w2_t, b2, fc_w, fc_b = torch_params
    h1 = jnp.einsum('nchw,kc->nkhw', x_nchw, w1_t) + b1[None, :, None, None]
    h1 = jnp.maximum(h1, 0.0)
    h2 = jnp.einsum('nkhw,jk->njhw', h1, w2_t) + b2[None, :, None, None]
    flat = h2.reshape(x_nchw.shape[0], -1)        # torch Flatten: (C, H, W) order
    return flat @ fc_w[:, None] + fc_b[None, :]


if __name__ == "__main__":
    # Linear(hidden_dim*hidden_dim, 1) forces H*W == hidden_dim.
    N, C, hid, H, W = 300, 4, 16, 4, 4
    key = jax.random.PRNGKey(0)
    kx, kx2, kp = jax.random.split(key, 3)
    x = jax.random.normal(kx, (N, C, H, W), jnp.float32)
    params = make_params(kp, C, hid, H, W)
    ref = reference_forward(x, params)

    # 1) f32 path, default block_n -> a single partially-filled tile: exercises the
    #    in-kernel ragged-tail handling (no wrapper pad / cast pass over x).
    fwd_f32 = jax.jit(angle_cnn_2d)
    out_f32 = jax.block_until_ready(fwd_f32(x, params))
    assert out_f32.shape == (N, 1)
    assert jnp.allclose(out_f32, ref, atol=1e-4, rtol=1e-3), (
        float(jnp.max(jnp.abs(out_f32 - ref))))

    # 2) Multi-tile + ragged tail (small block_n only to exercise the tiling path
    #    at a small N; the production default stays 8192).
    N2 = 1200
    x2 = jax.random.normal(kx2, (N2, C, H, W), jnp.float32)
    ref2 = reference_forward(x2, params)
    fwd_tiled = jax.jit(functools.partial(angle_cnn_2d, block_n=512))
    out2 = jax.block_until_ready(fwd_tiled(x2, params))
    assert out2.shape == (N2, 1)
    assert jnp.allclose(out2, ref2, atol=1e-4, rtol=1e-3), (
        float(jnp.max(jnp.abs(out2 - ref2))))

    # 3) bf16 MXU path: x cast inside the kernel, f32 accumulation / f32 epilogue.
    fwd_bf16 = jax.jit(functools.partial(angle_cnn_2d, compute_dtype=jnp.bfloat16))
    out_bf16 = jax.block_until_ready(fwd_bf16(x, params))
    assert out_bf16.shape == (N, 1)
    assert jnp.allclose(out_bf16, ref, atol=2e-2, rtol=2e-2), (
        float(jnp.max(jnp.abs(out_bf16 - ref))))

    print("KERNEL_OK")
</pallas_src>

<mosaic_0001>
module attributes {stable_mosaic.version = 11 : i64} {
  func.func @angle_cnn_kernel(%arg0: i32, %arg1: memref<384x64xf32, #tpu.memory_space<vmem>>, %arg2: memref<256x64xf32, #tpu.memory_space<vmem>>, %arg3: memref<256x128xf32, #tpu.memory_space<vmem>>, %arg4: memref<256x128xf32, #tpu.memory_space<vmem>>, %arg5: memref<1x1xf32, #tpu.memory_space<smem>>, %arg6: memref<1x3x128xf32, #tpu.memory_space<vmem>>) attributes {dimension_semantics = [#tpu.dimension_semantics<parallel>], iteration_bounds = array<i64: 1>, scalar_prefetch = 0 : i64, scratch_operands = 0 : i64, tpu.core_type = #tpu.core_type<tc>, window_params = [{transform_indices = @transform_0, window_bounds = array<i64: 384, 64>}, {pipeline_mode = #tpu.pipeline_mode<synchronous>, transform_indices = @transform_1, window_bounds = array<i64: 256, 64>}, {pipeline_mode = #tpu.pipeline_mode<synchronous>, transform_indices = @transform_2, window_bounds = array<i64: 256, 128>}, {pipeline_mode = #tpu.pipeline_mode<synchronous>, transform_indices = @transform_3, window_bounds = array<i64: 256, 128>}, {transform_indices = @transform_4, window_bounds = array<i64: 1, 1>}, {transform_indices = @transform_5, window_bounds = array<i64: 1, 3, 128>}]} {
    %c0 = arith.constant 0 : index
    %c0_0 = arith.constant 0 : index
    %0 = memref.load %arg5[%c0, %c0_0] : memref<1x1xf32, #tpu.memory_space<smem>>
    %c0_i32 = arith.constant 0 : i32
    %c128_i32 = arith.constant 128 : i32
    %1 = arith.muli %c0_i32, %c128_i32 : i32
    %2 = tpu.assume_multiple %1, 128 : i32
    %3 = arith.index_cast %2 : i32 to index
    %c0_1 = arith.constant 0 : index
    %4 = vector.load %arg1[%3, %c0_1] : memref<384x64xf32, #tpu.memory_space<vmem>>, vector<128x64xf32>
    %cst = arith.constant 0.000000e+00 : f32
    %5 = vector.broadcast %cst : f32 to vector<128xf32>
    %c0_2 = arith.constant 0 : index
    %c0_3 = arith.constant 0 : index
    %6 = vector.load %arg2[%c0_2, %c0_3] : memref<256x64xf32, #tpu.memory_space<vmem>>, vector<128x64xf32>
    %cst_4 = arith.constant dense<0.000000e+00> : vector<128x128xf32>
    %7 = tpu.matmul %6, %4, %cst_4 {dimension_numbers = #tpu.dot_dimension_numbers<[1], [1], [0], [0], [0, 0, 1, 0], [], []>} : vector<128x64xf32>, vector<128x64xf32>, vector<128x128xf32> -> vector<128x128xf32>
    %c0_5 = arith.constant 0 : index
    %c0_6 = arith.constant 0 : index
    %8 = vector.load %arg3[%c0_5, %c0_6] : memref<256x128xf32, #tpu.memory_space<vmem>>, vector<128x128xf32>
    %9 = arith.addf %7, %8 : vector<128x128xf32>
    %cst_7 = arith.constant 0.000000e+00 : f32
    %10 = vector.broadcast %cst_7 : f32 to vector<128x128xf32>
    %11 = arith.maximumf %9, %10 : vector<128x128xf32>
    %c0_8 = arith.constant 0 : index
    %c0_9 = arith.constant 0 : index
    %12 = vector.load %arg4[%c0_8, %c0_9] : memref<256x128xf32, #tpu.memory_space<vmem>>, vector<128x128xf32>
    %13 = arith.mulf %11, %12 : vector<128x128xf32>
    %cst_10 = arith.constant dense<0.000000e+00> : vector<128xf32>
    %14 = vector.multi_reduction <add>, %13, %cst_10 [0] : vector<128x128xf32> to vector<128xf32>
    %15 = arith.addf %5, %14 : vector<128xf32>
    %c128 = arith.constant 128 : index
    %c0_11 = arith.constant 0 : index
    %16 = vector.load %arg2[%c128, %c0_11] : memref<256x64xf32, #tpu.memory_space<vmem>>, vector<128x64xf32>
    %cst_12 = arith.constant dense<0.000000e+00> : vector<128x128xf32>
    %17 = tpu.matmul %16, %4, %cst_12 {dimension_numbers = #tpu.dot_dimension_numbers<[1], [1], [0], [0], [0, 0, 1, 0], [], []>} : vector<128x64xf32>, vector<128x64xf32>, vector<128x128xf32> -> vector<128x128xf32>
    %c128_13 = arith.constant 128 : index
    %c0_14 = arith.constant 0 : index
    %18 = vector.load %arg3[%c128_13, %c0_14] : memref<256x128xf32, #tpu.memory_space<vmem>>, vector<128x128xf32>
    %19 = arith.addf %17, %18 : vector<128x128xf32>
    %cst_15 = arith.constant 0.000000e+00 : f32
    %20 = vector.broadcast %cst_15 : f32 to vector<128x128xf32>
    %21 = arith.maximumf %19, %20 : vector<128x128xf32>
    %c128_16 = arith.constant 128 : index
    %c0_17 = arith.constant 0 : index
    %22 = vector.load %arg4[%c128_16, %c0_17] : memref<256x128xf32, #tpu.memory_space<vmem>>, vector<128x128xf32>
    %23 = arith.mulf %21, %22 : vector<128x128xf32>
    %cst_18 = arith.constant dense<0.000000e+00> : vector<128xf32>
    %24 = vector.multi_reduction <add>, %23, %cst_18 [0] : vector<128x128xf32> to vector<128xf32>
    %25 = arith.addf %15, %24 : vector<128xf32>
    %26 = vector.broadcast %0 : f32 to vector<128xf32>
    %27 = arith.addf %25, %26 : vector<128xf32>
    %c0_19 = arith.constant 0 : index
    %28 = arith.index_cast %c0_i32 : i32 to index
    %c0_20 = arith.constant 0 : index
    %29 = vector.load %arg6[%c0_19, %28, %c0_20] : memref<1x3x128xf32, #tpu.memory_space<vmem>>, vector<1x1x128xf32>
    %30 = vector.shape_cast %29 : vector<1x1x128xf32> to vector<128xf32>
    %31 = vector.shape_cast %27 : vector<128xf32> to vector<1x1x128xf32>
    tpu.vector_store %arg6[%c0_19, %28, %c0_20], %31 {strides = array<i32>} : memref<1x3x128xf32, #tpu.memory_space<vmem>>, vector<1x1x128xf32>,
    %c1_i32 = arith.constant 1 : i32
    %c128_i32_21 = arith.constant 128 : i32
    %32 = arith.muli %c1_i32, %c128_i32_21 : i32
    %33 = tpu.assume_multiple %32, 128 : i32
    %34 = arith.index_cast %33 : i32 to index
    %c0_22 = arith.constant 0 : index
    %35 = vector.load %arg1[%34, %c0_22] : memref<384x64xf32, #tpu.memory_space<vmem>>, vector<128x64xf32>
    %cst_23 = arith.constant 0.000000e+00 : f32
    %36 = vector.broadcast %cst_23 : f32 to vector<128xf32>
    %c0_24 = arith.constant 0 : index
    %c0_25 = arith.constant 0 : index
    %37 = vector.load %arg2[%c0_24, %c0_25] : memref<256x64xf32, #tpu.memory_space<vmem>>, vector<128x64xf32>
    %cst_26 = arith.constant dense<0.000000e+00> : vector<128x128xf32>
    %38 = tpu.matmul %37, %35, %cst_26 {dimension_numbers = #tpu.dot_dimension_numbers<[1], [1], [0], [0], [0, 0, 1, 0], [], []>} : vector<128x64xf32>, vector<128x64xf32>, vector<128x128xf32> -> vector<128x128xf32>
    %c0_27 = arith.constant 0 : index
    %c0_28 = arith.constant 0 : index
    %39 = vector.load %arg3[%c0_27, %c0_28] : memref<256x128xf32, #tpu.memory_space<vmem>>, vector<128x128xf32>
    %40 = arith.addf %38, %39 : vector<128x128xf32>
    %cst_29 = arith.constant 0.000000e+00 : f32
    %41 = vector.broadcast %cst_29 : f32 to vector<128x128xf32>
    %42 = arith.maximumf %40, %41 : vector<128x128xf32>
    %c0_30 = arith.constant 0 : index
    %c0_31 = arith.constant 0 : index
    %43 = vector.load %arg4[%c0_30, %c0_31] : memref<256x128xf32, #tpu.memory_space<vmem>>, vector<128x128xf32>
    %44 = arith.mulf %42, %43 : vector<128x128xf32>
    %cst_32 = arith.constant dense<0.000000e+00> : vector<128xf32>
    %45 = vector.multi_reduction <add>, %44, %cst_32 [0] : vector<128x128xf32> to vector<128xf32>
    %46 = arith.addf %36, %45 : vector<128xf32>
    %c128_33 = arith.constant 128 : index
    %c0_34 = arith.constant 0 : index
    %47 = vector.load %arg2[%c128_33, %c0_34] : memref<256x64xf32, #tpu.memory_space<vmem>>, vector<128x64xf32>
    %cst_35 = arith.constant dense<0.000000e+00> : vector<128x128xf32>
    %48 = tpu.matmul %47, %35, %cst_35 {dimension_numbers = #tpu.dot_dimension_numbers<[1], [1], [0], [0], [0, 0, 1, 0], [], []>} : vector<128x64xf32>, vector<128x64xf32>, vector<128x128xf32> -> vector<128x128xf32>
    %c128_36 = arith.constant 128 : index
    %c0_37 = arith.constant 0 : index
    %49 = vector.load %arg3[%c128_36, %c0_37] : memref<256x128xf32, #tpu.memory_space<vmem>>, vector<128x128xf32>
    %50 = arith.addf %48, %49 : vector<128x128xf32>
    %cst_38 = arith.constant 0.000000e+00 : f32
    %51 = vector.broadcast %cst_38 : f32 to vector<128x128xf32>
    %52 = arith.maximumf %50, %51 : vector<128x128xf32>
    %c128_39 = arith.constant 128 : index
    %c0_40 = arith.constant 0 : index
    %53 = vector.load %arg4[%c128_39, %c0_40] : memref<256x128xf32, #tpu.memory_space<vmem>>, vector<128x128xf32>
    %54 = arith.mulf %52, %53 : vector<128x128xf32>
    %cst_41 = arith.constant dense<0.000000e+00> : vector<128xf32>
    %55 = vector.multi_reduction <add>, %54, %cst_41 [0] : vector<128x128xf32> to vector<128xf32>
    %56 = arith.addf %46, %55 : vector<128xf32>
    %57 = vector.broadcast %0 : f32 to vector<128xf32>
    %58 = arith.addf %56, %57 : vector<128xf32>
    %c0_42 = arith.constant 0 : index
    %59 = arith.index_cast %c1_i32 : i32 to index
    %c0_43 = arith.constant 0 : index
    %60 = vector.load %arg6[%c0_42, %59, %c0_43] : memref<1x3x128xf32, #tpu.memory_space<vmem>>, vector<1x1x128xf32>
    %61 = vector.shape_cast %60 : vector<1x1x128xf32> to vector<128xf32>
    %62 = vector.shape_cast %58 : vector<128xf32> to vector<1x1x128xf32>
    tpu.vector_store %arg6[%c0_42, %59, %c0_43], %62 {strides = array<i32>} : memref<1x3x128xf32, #tpu.memory_space<vmem>>, vector<1x1x128xf32>,
    %c2_i32 = arith.constant 2 : i32
    %c128_i32_44 = arith.constant 128 : i32
    %63 = arith.muli %c2_i32, %c128_i32_44 : i32
    %64 = tpu.assume_multiple %63, 128 : i32
    %65 = arith.index_cast %64 : i32 to index
    %c0_45 = arith.constant 0 : index
    %66 = vector.load %arg1[%65, %c0_45] : memref<384x64xf32, #tpu.memory_space<vmem>>, vector<128x64xf32>
    %cst_46 = arith.constant 0.000000e+00 : f32
    %67 = vector.broadcast %cst_46 : f32 to vector<128xf32>
    %c0_47 = arith.constant 0 : index
    %c0_48 = arith.constant 0 : index
    %68 = vector.load %arg2[%c0_47, %c0_48] : memref<256x64xf32, #tpu.memory_space<vmem>>, vector<128x64xf32>
    %cst_49 = arith.constant dense<0.000000e+00> : vector<128x128xf32>
    %69 = tpu.matmul %68, %66, %cst_49 {dimension_numbers = #tpu.dot_dimension_numbers<[1], [1], [0], [0], [0, 0, 1, 0], [], []>} : vector<128x64xf32>, vector<128x64xf32>, vector<128x128xf32> -> vector<128x128xf32>
    %c0_50 = arith.constant 0 : index
    %c0_51 = arith.constant 0 : index
    %70 = vector.load %arg3[%c0_50, %c0_51] : memref<256x128xf32, #tpu.memory_space<vmem>>, vector<128x128xf32>
    %71 = arith.addf %69, %70 : vector<128x128xf32>
    %cst_52 = arith.constant 0.000000e+00 : f32
    %72 = vector.broadcast %cst_52 : f32 to vector<128x128xf32>
    %73 = arith.maximumf %71, %72 : vector<128x128xf32>
    %c0_53 = arith.constant 0 : index
    %c0_54 = arith.constant 0 : index
    %74 = vector.load %arg4[%c0_53, %c0_54] : memref<256x128xf32, #tpu.memory_space<vmem>>, vector<128x128xf32>
    %75 = arith.mulf %73, %74 : vector<128x128xf32>
    %cst_55 = arith.constant dense<0.000000e+00> : vector<128xf32>
    %76 = vector.multi_reduction <add>, %75, %cst_55 [0] : vector<128x128xf32> to vector<128xf32>
    %77 = arith.addf %67, %76 : vector<128xf32>
    %c128_56 = arith.constant 128 : index
    %c0_57 = arith.constant 0 : index
    %78 = vector.load %arg2[%c128_56, %c0_57] : memref<256x64xf32, #tpu.memory_space<vmem>>, vector<128x64xf32>
    %cst_58 = arith.constant dense<0.000000e+00> : vector<128x128xf32>
    %79 = tpu.matmul %78, %66, %cst_58 {dimension_numbers = #tpu.dot_dimension_numbers<[1], [1], [0], [0], [0, 0, 1, 0], [], []>} : vector<128x64xf32>, vector<128x64xf32>, vector<128x128xf32> -> vector<128x128xf32>
    %c128_59 = arith.constant 128 : index
    %c0_60 = arith.constant 0 : index
    %80 = vector.load %arg3[%c128_59, %c0_60] : memref<256x128xf32, #tpu.memory_space<vmem>>, vector<128x128xf32>
    %81 = arith.addf %79, %80 : vector<128x128xf32>
    %cst_61 = arith.constant 0.000000e+00 : f32
    %82 = vector.broadcast %cst_61 : f32 to vector<128x128xf32>
    %83 = arith.maximumf %81, %82 : vector<128x128xf32>
    %c128_62 = arith.constant 128 : index
    %c0_63 = arith.constant 0 : index
    %84 = vector.load %arg4[%c128_62, %c0_63] : memref<256x128xf32, #tpu.memory_space<vmem>>, vector<128x128xf32>
    %85 = arith.mulf %83, %84 : vector<128x128xf32>
    %cst_64 = arith.constant dense<0.000000e+00> : vector<128xf32>
    %86 = vector.multi_reduction <add>, %85, %cst_64 [0] : vector<128x128xf32> to vector<128xf32>
    %87 = arith.addf %77, %86 : vector<128xf32>
    %88 = vector.broadcast %0 : f32 to vector<128xf32>
    %89 = arith.addf %87, %88 : vector<128xf32>
    %c0_65 = arith.constant 0 : index
    %90 = arith.index_cast %c2_i32 : i32 to index
    %c0_66 = arith.constant 0 : index
    %91 = vector.load %arg6[%c0_65, %90, %c0_66] : memref<1x3x128xf32, #tpu.memory_space<vmem>>, vector<1x1x128xf32>
    %92 = vector.shape_cast %91 : vector<1x1x128xf32> to vector<128xf32>
    %93 = vector.shape_cast %89 : vector<128xf32> to vector<1x1x128xf32>
    tpu.vector_store %arg6[%c0_65, %90, %c0_66], %93 {strides = array<i32>} : memref<1x3x128xf32, #tpu.memory_space<vmem>>, vector<1x1x128xf32>,
    %c3_i32 = arith.constant 3 : i32
    return
  }
  func.func @transform_0(%arg0: i32) -> (i32, i32) {
    %c0_i32 = arith.constant 0 : i32
    %c0_i32_0 = arith.constant 0 : i32
    return %arg0, %c0_i32 : i32, i32
  }
  func.func @transform_1(%arg0: i32) -> (i32, i32) {
    %c0_i32 = arith.constant 0 : i32
    %c0_i32_0 = arith.constant 0 : i32
    %c0_i32_1 = arith.constant 0 : i32
    return %c0_i32, %c0_i32_0 : i32, i32
  }
  func.func @transform_2(%arg0: i32) -> (i32, i32) {
    %c0_i32 = arith.constant 0 : i32
    %c0_i32_0 = arith.constant 0 : i32
    %c0_i32_1 = arith.constant 0 : i32
    return %c0_i32, %c0_i32_0 : i32, i32
  }
  func.func @transform_3(%arg0: i32) -> (i32, i32) {
    %c0_i32 = arith.constant 0 : i32
    %c0_i32_0 = arith.constant 0 : i32
    %c0_i32_1 = arith.constant 0 : i32
    return %c0_i32, %c0_i32_0 : i32, i32
  }
  func.func @transform_4(%arg0: i32) -> (i32, i32) {
    %c0_i32 = arith.constant 0 : i32
    %c0_i32_0 = arith.constant 0 : i32
    %c0_i32_1 = arith.constant 0 : i32
    return %c0_i32, %c0_i32_0 : i32, i32
  }
  func.func @transform_5(%arg0: i32) -> (i32, i32, i32) {
    %c0_i32 = arith.constant 0 : i32
    %c0_i32_0 = arith.constant 0 : i32
    %c0_i32_1 = arith.constant 0 : i32
    return %arg0, %c0_i32, %c0_i32_0 : i32, i32, i32
  }
}

</mosaic_0001>

<bundles_post_ra>
// kernel: tile.8
= control target key start
LH: loop header
LB: loop body
LE: loop exit
PB: predicated region body
PF: predicated region fallthrough
CT: control target
= control target key end

     0   :  { %s28_s0 = inlined_call_operand.vmem [shape: f32[16], index: 0, kind: input, shape index: {}]   ;;  %s29_s1 = inlined_call_operand.vmem [shape: f32[16,16], index: 1, kind: output, shape index: {}]  }
   0x1   :  { %v4_v0 = vld [vmem:[%s28_s0] ss:$0 sm:$0xff] }
   0x2   :  { %5 = vst [vmem:[%s29_s1] sm:$0xff] %v4_v0  ;;  %8 = vst [vmem:[%s29_s1 + $0x8] sm:$0xff] %v4_v0 }

// kernel: angle_cnn_2d.1
= control target key start
LH: loop header
LB: loop body
LE: loop exit
PB: predicated region body
PF: predicated region fallthrough
CT: control target
= control target key end

     0   :  { %vm70_vm0 = vcmask 523264   ;;  %s4291_s0 = inlined_call_operand.vmem [shape: f32[300,64], index: 0, kind: input, shape index: {}]   ;;  %s4292_s1 = inlined_call_operand.vmem [shape: f32[256,64], index: 1, kind: input, shape index: {}]   ;;  %s4293_s2 = inlined_call_operand.vmem [shape: f32[256,128], index: 2, kind: input, shape index: {}]   ;;  %s4294_s3 = inlined_call_operand.vmem [shape: f32[256,128], index: 3, kind: input, shape index: {}]   ;;  %s4295_s4 = inlined_call_operand.<no memory space> [shape: f32[1,1], index: 4, kind: input, shape index: {}]   ;;  %s4296_s5 = inlined_call_operand.vmem [shape: f32[1,3,128], index: 5, kind: output, shape index: {}]  }
   0x1   :  { %v22_v0 = vld [vmem:[%s4291_s0] sm:$0xff]  ;;  %v23_v1 = vld [vmem:[%s4291_s0 + $0x8] sm:$0xff]  ;;  %vm3076_vm1 = vmpackc.low %vm70_vm0, %vm70_vm0 }
   0x2   :  { %v2750_v3 = vpack.c.bf16 %v23_v1, %v22_v0  ;;  %v24_v4 = vld [vmem:[%s4291_s0 + $0x10] sm:$0xff]  ;;  %v25_v5 = vld [vmem:[%s4291_s0 + $0x18] sm:$0xff]  ;;  %v3101_v7 = vld [vmem:[%s4292_s1] sm:$0xff] }
   0x3   :  { %v2756_v6 = vpack.c.bf16 %v25_v5, %v24_v4  ;;  %v26_v8 = vld [vmem:[%s4291_s0 + $0x20] sm:$0xff]  ;;  %v27_v9 = vld [vmem:[%s4291_s0 + $0x28] sm:$0xff]  ;;  %2446 = vmatprep.mubr.msk.f32.mxu0 %vm70_vm0, %v3101_v7  ;;  %v28_v12 = vld [vmem:[%s4291_s0 + $0x30] sm:$0xff] }
   0x4   :  { %2752 = vmatprep.subr.msk.bf16.mxu0 %vm3076_vm1, %v2750_v3  ;;  %2800 = vmatprep.subr.msk.bf16.mxu1 %vm3076_vm1, %v2750_v3  ;;  %v3114_v10 = vld [vmem:[%s4292_s1 + $0x80] sm:$0xff]  ;;  %v2762_v11 = vpack.c.bf16 %v27_v9, %v26_v8  ;;  %v29_v13 = vld [vmem:[%s4291_s0 + $0x38] sm:$0xff]  ;;  %v31_v16 = vld [vmem:[%s4291_s0 + $0x48] sm:$0xff] }
   0x5   :  { %2755 = vmatpush3.bf16.xpose.msk.msra.mxu0 %vm3076_vm1, %v2750_v3  ;;  %2803 = vmatpush3.bf16.xpose.msk.msra.mxu1 %vm3076_vm1, %v2750_v3  ;;  %v2768_v14 = vpack.c.bf16 %v29_v13, %v28_v12  ;;  %v30_v15 = vld [vmem:[%s4291_s0 + $0x40] sm:$0xff]  ;;  %v32_v18 = vld [vmem:[%s4291_s0 + $0x50] sm:$0xff]  ;;  %v33_v19 = vld [vmem:[%s4291_s0 + $0x58] sm:$0xff] }
   0x6   :  { %2758 = vmatprep.subr.msk.bf16.mxu0 %vm3076_vm1, %v2756_v6  ;;  %2806 = vmatprep.subr.msk.bf16.mxu1 %vm3076_vm1, %v2756_v6  ;;  %v2774_v17 = vpack.c.bf16 %v31_v16, %v30_v15  ;;  %v2780_v20 = vpack.c.bf16 %v33_v19, %v32_v18  ;;  %v34_v21 = vld [vmem:[%s4291_s0 + $0x60] sm:$0xff]  ;;  %v35_v22 = vld [vmem:[%s4291_s0 + $0x68] sm:$0xff]  ;;  %v36_v24 = vld [vmem:[%s4291_s0 + $0x70] sm:$0xff] }
   0x7   :  { %2502 = vmatprep.mubr.msk.f32.mxu1 %vm70_vm0, %v3114_v10  ;;  %v2786_v23 = vpack.c.bf16 %v35_v22, %v34_v21  ;;  %v37_v25 = vld [vmem:[%s4291_s0 + $0x78] sm:$0xff]  ;;  %v2062_v27 = vld [vmem:[%s4291_s0 + $0x80] sm:$0xff]  ;;  %v2063_v28 = vld [vmem:[%s4291_s0 + $0x88] sm:$0xff] }
   0x8   :  { %v2792_v26 = vpack.c.bf16 %v37_v25, %v36_v24  ;;  %v2846_v29 = vpack.c.bf16 %v2063_v28, %v2062_v27  ;;  %v2064_v30 = vld [vmem:[%s4291_s0 + $0x90] sm:$0xff]  ;;  %v2065_v31 = vld [vmem:[%s4291_s0 + $0x98] sm:$0xff]  ;;  %v3219_v32 = vld [vmem:[%s4292_s1 + $0x8] sm:$0xff] }
   0x9   :  { %v3224_v33 = vld [vmem:[%s4292_s1 + $0x88] sm:$0xff]  ;;  %v3229_v34 = vld [vmem:[%s4292_s1 + $0x10] sm:$0xff]  ;;  %v2852_v36 = vpack.c.bf16 %v2065_v31, %v2064_v30  ;;  %v3247_v37 = vld [vmem:[%s4292_s1 + $0x18] sm:$0xff] }
   0xa   :  { %v3234_v35 = vld [vmem:[%s4292_s1 + $0x90] sm:$0xff]  ;;  %v3252_v38 = vld [vmem:[%s4292_s1 + $0x98] sm:$0xff]  ;;  %v3261_v39 = vld [vmem:[%s4292_s1 + $0x20] sm:$0xff] }
   0xb   :  { %v3266_v40 = vld [vmem:[%s4292_s1 + $0xa0] sm:$0xff]  ;;  %v2067_v42 = vld [vmem:[%s4291_s0 + $0xa8] sm:$0xff]  ;;  %v3299_v45 = vld [vmem:[%s4292_s1 + $0x30] sm:$0xff] }
   0xc   :  { %v2066_v41 = vld [vmem:[%s4291_s0 + $0xa0] sm:$0xff]  ;;  %v3289_v43 = vld [vmem:[%s4292_s1 + $0x28] sm:$0xff]  ;;  %v3304_v46 = vld [vmem:[%s4292_s1 + $0xb0] sm:$0xff] }
   0xd   :  { %2761 = vmatpush3.bf16.xpose.msk.msra.mxu0 %vm3076_vm1, %v2756_v6  ;;  %2809 = vmatpush3.bf16.xpose.msk.msra.mxu1 %vm3076_vm1, %v2756_v6  ;;  %v3294_v44 = vld [vmem:[%s4292_s1 + $0xa8] sm:$0xff]  ;;  %v2858_v47 = vpack.c.bf16 %v2067_v42, %v2066_v41  ;;  %v3317_v48 = vld [vmem:[%s4292_s1 + $0x38] sm:$0xff]  ;;  %v3331_v50 = vld [vmem:[%s4292_s1 + $0x40] sm:$0xff] }
   0xe   :  { %2764 = vmatprep.subr.msk.bf16.mxu0 %vm3076_vm1, %v2762_v11  ;;  %2812 = vmatprep.subr.msk.bf16.mxu1 %vm3076_vm1, %v2762_v11  ;;  %v3322_v49 = vld [vmem:[%s4292_s1 + $0xb8] sm:$0xff]  ;;  %v3336_v51 = vld [vmem:[%s4292_s1 + $0xc0] sm:$0xff]  ;;  %v2068_v52 = vld [vmem:[%s4291_s0 + $0xb0] sm:$0xff] }
   0xf   :  { %v2069_v53 = vld [vmem:[%s4291_s0 + $0xb8] sm:$0xff]  ;;  %v3359_v54 = vld [vmem:[%s4292_s1 + $0x48] sm:$0xff]  ;;  %v3369_v56 = vld [vmem:[%s4292_s1 + $0x50] sm:$0xff] }
  0x10   :  { %v3364_v55 = vld [vmem:[%s4292_s1 + $0xc8] sm:$0xff]  ;;  %v3374_v57 = vld [vmem:[%s4292_s1 + $0xd0] sm:$0xff]  ;;  %v2864_v58 = vpack.c.bf16 %v2069_v53, %v2068_v52  ;;  %v3387_v59 = vld [vmem:[%s4292_s1 + $0x58] sm:$0xff] }
  0x11   :  { %v3392_v60 = vld [vmem:[%s4292_s1 + $0xd8] sm:$0xff]  ;;  %v3401_v61 = vld [vmem:[%s4292_s1 + $0x60] sm:$0xff]  ;;  %v2071_v0 = vld [vmem:[%s4291_s0 + $0xc8] sm:$0xff] }
  0x12   :  { %v3406_v62 = vld [vmem:[%s4292_s1 + $0xe0] sm:$0xff]  ;;  %v3429_v1 = vld [vmem:[%s4292_s1 + $0x68] sm:$0xff]  ;;  %v3439_v4 = vld [vmem:[%s4292_s1 + $0x70] sm:$0xff] }
  0x13   :  { %v2070_v63 = vld [vmem:[%s4291_s0 + $0xc0] sm:$0xff]  ;;  %v3434_v3 = vld [vmem:[%s4292_s1 + $0xe8] sm:$0xff]  ;;  %v3444_v5 = vld [vmem:[%s4292_s1 + $0xf0] sm:$0xff] }
  0x14   :  { %v2870_v6 = vpack.c.bf16 %v2071_v0, %v2070_v63  ;;  %v3457_v8 = vld [vmem:[%s4292_s1 + $0x78] sm:$0xff]  ;;  %v2075_v15 = vld [vmem:[%s4291_s0 + $0xe8] sm:$0xff]  ;;  %v2156_v63 = vld [vmem:[%s4291_s0 + $0x170] sm:$0xff] }
  0x15   :  { %2767 = vmatpush3.bf16.xpose.msk.msra.mxu0 %vm3076_vm1, %v2762_v11  ;;  %2815 = vmatpush3.bf16.xpose.msk.msra.mxu1 %vm3076_vm1, %v2762_v11  ;;  %v3462_v9 = vld [vmem:[%s4292_s1 + $0xf8] sm:$0xff]  ;;  %v2072_v11 = vld [vmem:[%s4291_s0 + $0xd0] sm:$0xff]  ;;  %v2143_v21 = vld [vmem:[%s4291_s0 + $0x108] sm:$0xff] }
  0x16   :  { %2770 = vmatprep.subr.msk.bf16.mxu0 %vm3076_vm1, %v2768_v14  ;;  %2818 = vmatprep.subr.msk.bf16.mxu1 %vm3076_vm1, %v2768_v14  ;;  %v2073_v12 = vld [vmem:[%s4291_s0 + $0xd8] sm:$0xff]  ;;  %v2147_v27 = vld [vmem:[%s4291_s0 + $0x128] sm:$0xff] }
  0x17   :  { %v2876_v13 = vpack.c.bf16 %v2073_v12, %v2072_v11  ;;  %v2077_v18 = vld [vmem:[%s4291_s0 + $0xf8] sm:$0xff]  ;;  %v2151_v41 = vld [vmem:[%s4291_s0 + $0x148] sm:$0xff] }
  0x18   :  { %v2145_v24 = vld [vmem:[%s4291_s0 + $0x118] sm:$0xff]  ;;  %v3765_v2 = vld [vmem:[%s4293_s2 + $0x8] sm:$0xff] }
  0x19   :  { %v2149_v30 = vld [vmem:[%s4291_s0 + $0x138] sm:$0xff] }
  0x1a   :  { %v2153_v52 = vld [vmem:[%s4291_s0 + $0x158] sm:$0xff] }
  0x1b   :  { %v2157_v0 = vld [vmem:[%s4291_s0 + $0x178] sm:$0xff] }
  0x1c   :  { %v3838_v11 = vld [vmem:[%s4294_s3 + $0x98] sm:$0xff] }
  0x1d   :  { %2773 = vmatpush3.bf16.xpose.msk.msra.mxu0 %vm3076_vm1, %v2768_v14  ;;  %2821 = vmatpush3.bf16.xpose.msk.msra.mxu1 %vm3076_vm1, %v2768_v14  ;;  %v2074_v14 = vld [vmem:[%s4291_s0 + $0xe0] sm:$0xff] }
  0x1e   :  { %2776 = vmatprep.subr.msk.bf16.mxu0 %vm3076_vm1, %v2774_v17  ;;  %2824 = vmatprep.subr.msk.bf16.mxu1 %vm3076_vm1, %v2774_v17  ;;  %v2882_v16 = vpack.c.bf16 %v2075_v15, %v2074_v14 }
  0x25   :  { %2779 = vmatpush3.bf16.xpose.msk.msra.mxu0 %vm3076_vm1, %v2774_v17  ;;  %2827 = vmatpush3.bf16.xpose.msk.msra.mxu1 %vm3076_vm1, %v2774_v17  ;;  %v2076_v17 = vld [vmem:[%s4291_s0 + $0xf0] sm:$0xff] }
  0x26   :  { %2782 = vmatprep.subr.msk.bf16.mxu0 %vm3076_vm1, %v2780_v20  ;;  %2830 = vmatprep.subr.msk.bf16.mxu1 %vm3076_vm1, %v2780_v20  ;;  %v2888_v19 = vpack.c.bf16 %v2077_v18, %v2076_v17  ;;  %v3846_v17 = vld [vmem:[%s4294_s3 + $0x10] sm:$0xff] }
  0x2d   :  { %2785 = vmatpush3.bf16.xpose.msk.msra.mxu0 %vm3076_vm1, %v2780_v20  ;;  %2833 = vmatpush3.bf16.xpose.msk.msra.mxu1 %vm3076_vm1, %v2780_v20  ;;  %v2142_v20 = vld [vmem:[%s4291_s0 + $0x100] sm:$0xff] }
  0x2e   :  { %2788 = vmatprep.subr.msk.bf16.mxu0 %vm3076_vm1, %v2786_v23  ;;  %2836 = vmatprep.subr.msk.bf16.mxu1 %vm3076_vm1, %v2786_v23  ;;  %v2942_v22 = vpack.c.bf16 %v2143_v21, %v2142_v20  ;;  %v3857_v20 = vld [vmem:[%s4293_s2 + $0xa8] sm:$0xff] }
  0x35   :  { %2791 = vmatpush3.bf16.xpose.msk.msra.mxu0 %vm3076_vm1, %v2786_v23  ;;  %2839 = vmatpush3.bf16.xpose.msk.msra.mxu1 %vm3076_vm1, %v2786_v23  ;;  %v2144_v23 = vld [vmem:[%s4291_s0 + $0x110] sm:$0xff] }
  0x36   :  { %2794 = vmatprep.subr.msk.bf16.mxu0 %vm3076_vm1, %v2792_v26  ;;  %2842 = vmatprep.subr.msk.bf16.mxu1 %vm3076_vm1, %v2792_v26  ;;  %v2948_v25 = vpack.c.bf16 %v2145_v24, %v2144_v23  ;;  %v3862_v23 = vld [vmem:[%s4294_s3 + $0x90] sm:$0xff]  ;;  %v3867_v24 = vld [vmem:[%s4293_s2 + $0x20] sm:$0xff] }
  0x3d   :  { %2797 = vmatpush3.bf16.xpose.msk.msra.mxu0 %vm3076_vm1, %v2792_v26  ;;  %2845 = vmatpush3.bf16.xpose.msk.msra.mxu1 %vm3076_vm1, %v2792_v26  ;;  %v2146_v26 = vld [vmem:[%s4291_s0 + $0x120] sm:$0xff] }
  0x3e   :  { %2848 = vmatprep.subr.msk.bf16.mxu0 %vm3076_vm1, %v2846_v29  ;;  %2896 = vmatprep.subr.msk.bf16.mxu1 %vm3076_vm1, %v2846_v29  ;;  %v2954_v28 = vpack.c.bf16 %v2147_v27, %v2146_v26 }
  0x44   :  { %2447 = vmatmul.mubr.msk.f32.vlgmr.msra.gmra.mrb[0].mxu0 %vm70_vm0, %v3219_v32  ;;  %2503 = vmatmul.mubr.msk.f32.vlgmr.msra.gmra.mrb[0].mxu1 %vm70_vm0, %v3224_v33 }
  0x45   :  { %2851 = vmatpush3.bf16.xpose.msk.msra.mxu0 %vm3076_vm1, %v2846_v29  ;;  %2899 = vmatpush3.bf16.xpose.msk.msra.mxu1 %vm3076_vm1, %v2846_v29  ;;  %v2148_v29 = vld [vmem:[%s4291_s0 + $0x130] sm:$0xff] }
  0x46   :  { %2449 = vmatprep.mubr.msk.f32.mxu0 %vm70_vm0, %v3229_v34  ;;  %2505 = vmatprep.mubr.msk.f32.mxu1 %vm70_vm0, %v3234_v35  ;;  %v2960_v31 = vpack.c.bf16 %v2149_v30, %v2148_v29 }
  0x47   :  { %2854 = vmatprep.subr.msk.bf16.mxu0 %vm3076_vm1, %v2852_v36  ;;  %2902 = vmatprep.subr.msk.bf16.mxu1 %vm3076_vm1, %v2852_v36 }
  0x48   :  { %2450 = vmatmul.mubr.msk.f32.gmra.mrb[2].mxu0 %vm70_vm0, %v3247_v37  ;;  %2506 = vmatmul.mubr.msk.f32.gmra.mrb[2].mxu1 %vm70_vm0, %v3252_v38 }
  0x49   :  { %2452 = vmatprep.mubr.msk.f32.mxu0 %vm70_vm0, %v3261_v39  ;;  %2508 = vmatprep.mubr.msk.f32.mxu1 %vm70_vm0, %v3266_v40 }
  0x4c   :  { %2453 = vmatmul.mubr.msk.f32.gmra.mrb[4].mxu0 %vm70_vm0, %v3289_v43  ;;  %2509 = vmatmul.mubr.msk.f32.gmra.mrb[4].mxu1 %vm70_vm0, %v3294_v44 }
  0x4d   :  { %2857 = vmatpush3.bf16.xpose.msk.msra.mxu0 %vm3076_vm1, %v2852_v36  ;;  %2905 = vmatpush3.bf16.xpose.msk.msra.mxu1 %vm3076_vm1, %v2852_v36  ;;  %v2150_v36 = vld [vmem:[%s4291_s0 + $0x140] sm:$0xff] }
  0x4e   :  { %2455 = vmatprep.mubr.msk.f32.mxu0 %vm70_vm0, %v3299_v45  ;;  %2511 = vmatprep.mubr.msk.f32.mxu1 %vm70_vm0, %v3304_v46  ;;  %v2966_v42 = vpack.c.bf16 %v2151_v41, %v2150_v36 }
  0x4f   :  { %2860 = vmatprep.subr.msk.bf16.mxu0 %vm3076_vm1, %v2858_v47  ;;  %2908 = vmatprep.subr.msk.bf16.mxu1 %vm3076_vm1, %v2858_v47 }
  0x50   :  { %2456 = vmatmul.mubr.msk.f32.gmra.mrb[6].mxu0 %vm70_vm0, %v3317_v48  ;;  %2512 = vmatmul.mubr.msk.f32.gmra.mrb[6].mxu1 %vm70_vm0, %v3322_v49 }
  0x51   :  { %2458 = vmatprep.mubr.msk.f32.mxu0 %vm70_vm0, %v3331_v50  ;;  %2514 = vmatprep.mubr.msk.f32.mxu1 %vm70_vm0, %v3336_v51 }
  0x54   :  { %2459 = vmatmul.mubr.msk.f32.gmra.mrb[8].mxu0 %vm70_vm0, %v3359_v54  ;;  %2515 = vmatmul.mubr.msk.f32.gmra.mrb[8].mxu1 %vm70_vm0, %v3364_v55 }
  0x55   :  { %2863 = vmatpush3.bf16.xpose.msk.msra.mxu0 %vm3076_vm1, %v2858_v47  ;;  %2911 = vmatpush3.bf16.xpose.msk.msra.mxu1 %vm3076_vm1, %v2858_v47  ;;  %v2152_v47 = vld [vmem:[%s4291_s0 + $0x150] sm:$0xff] }
  0x56   :  { %2461 = vmatprep.mubr.msk.f32.mxu0 %vm70_vm0, %v3369_v56  ;;  %2517 = vmatprep.mubr.msk.f32.mxu1 %vm70_vm0, %v3374_v57  ;;  %v2972_v53 = vpack.c.bf16 %v2153_v52, %v2152_v47  ;;  %v3880_v47 = vld [vmem:[%s4294_s3 + $0x28] sm:$0xff] }
  0x57   :  { %2866 = vmatprep.subr.msk.bf16.mxu0 %vm3076_vm1, %v2864_v58  ;;  %2914 = vmatprep.subr.msk.bf16.mxu1 %vm3076_vm1, %v2864_v58  ;;  %4362 = vst [vmem:[#allocation3_spill] sm:$0xff] %v3880_v47 }
  0x58   :  { %2462 = vmatmul.mubr.msk.f32.gmra.mrb[10].mxu0 %vm70_vm0, %v3387_v59  ;;  %2518 = vmatmul.mubr.msk.f32.gmra.mrb[10].mxu1 %vm70_vm0, %v3392_v60 }
  0x59   :  { %2464 = vmatprep.mubr.msk.f32.mxu0 %vm70_vm0, %v3401_v61  ;;  %2520 = vmatprep.mubr.msk.f32.mxu1 %vm70_vm0, %v3406_v62 }
  0x5c   :  { %2465 = vmatmul.mubr.msk.f32.gmra.mrb[12].mxu0 %vm70_vm0, %v3429_v1  ;;  %2521 = vmatmul.mubr.msk.f32.gmra.mrb[12].mxu1 %vm70_vm0, %v3434_v3 }
  0x5d   :  { %2869 = vmatpush3.bf16.xpose.msk.msra.mxu0 %vm3076_vm1, %v2864_v58  ;;  %2917 = vmatpush3.bf16.xpose.msk.msra.mxu1 %vm3076_vm1, %v2864_v58 }
  0x5e   :  { %2467 = vmatprep.mubr.msk.f32.mxu0 %vm70_vm0, %v3439_v4  ;;  %2523 = vmatprep.mubr.msk.f32.mxu1 %vm70_vm0, %v3444_v5 }
  0x5f   :  { %2872 = vmatprep.subr.msk.bf16.mxu0 %vm3076_vm1, %v2870_v6  ;;  %2920 = vmatprep.subr.msk.bf16.mxu1 %vm3076_vm1, %v2870_v6 }
  0x60   :  { %2468 = vmatmul.mubr.msk.f32.gmra.mrb[14].mxu0 %vm70_vm0, %v3457_v8  ;;  %2524 = vmatmul.mubr.msk.f32.gmra.mrb[14].mxu1 %vm70_vm0, %v3462_v9 }
  0x61   :  { %2558 = vmatprep.mubr.msk.f32.mxu0 %vm70_vm0, %v3101_v7  ;;  %2614 = vmatprep.mubr.msk.f32.mxu1 %vm70_vm0, %v3114_v10 }
  0x65   :  { %2875 = vmatpush3.bf16.xpose.msk.msra.mxu0 %vm3076_vm1, %v2870_v6  ;;  %2923 = vmatpush3.bf16.xpose.msk.msra.mxu1 %vm3076_vm1, %v2870_v6  ;;  %v2984_v6 = vpack.c.bf16 %v2157_v0, %v2156_v63  ;;  %v3888_v63 = vld [vmem:[%s4294_s3 + $0xa8] sm:$0xff] }
  0x66   :  { %2878 = vmatprep.subr.msk.bf16.mxu0 %vm3076_vm1, %v2876_v13  ;;  %2926 = vmatprep.subr.msk.bf16.mxu1 %vm3076_vm1, %v2876_v13  ;;  %4363 = vst [vmem:[#allocation4_spill] sm:$0xff] %v3888_v63 }
  0x6d   :  { %2881 = vmatpush3.bf16.xpose.msk.msra.mxu0 %vm3076_vm1, %v2876_v13  ;;  %2929 = vmatpush3.bf16.xpose.msk.msra.mxu1 %vm3076_vm1, %v2876_v13 }
  0x6e   :  { %2884 = vmatprep.subr.msk.bf16.mxu0 %vm3076_vm1, %v2882_v16  ;;  %2932 = vmatprep.subr.msk.bf16.mxu1 %vm3076_vm1, %v2882_v16 }
  0x75   :  { %2887 = vmatpush3.bf16.xpose.msk.msra.mxu0 %vm3076_vm1, %v2882_v16  ;;  %2935 = vmatpush3.bf16.xpose.msk.msra.mxu1 %vm3076_vm1, %v2882_v16 }
  0x76   :  { %2890 = vmatprep.subr.msk.bf16.mxu0 %vm3076_vm1, %v2888_v19  ;;  %2938 = vmatprep.subr.msk.bf16.mxu1 %vm3076_vm1, %v2888_v19 }
  0x7d   :  { %2893 = vmatpush3.bf16.xpose.msk.msra.mxu0 %vm3076_vm1, %v2888_v19  ;;  %2941 = vmatpush3.bf16.xpose.msk.msra.mxu1 %vm3076_vm1, %v2888_v19  ;;  %v3852_v19 = vld [vmem:[%s4293_s2 + $0x28] sm:$0xff] }
  0x7e   :  { %2944 = vmatprep.subr.msk.bf16.mxu0 %vm3076_vm1, %v2942_v22  ;;  %2992 = vmatprep.subr.msk.bf16.mxu1 %vm3076_vm1, %v2942_v22 }
  0x84   :  { %2559 = vmatmul.mubr.msk.f32.vlgmr.msra.gmra.mrb[16].mxu0 %vm70_vm0, %v3219_v32  ;;  %2615 = vmatmul.mubr.msk.f32.vlgmr.msra.gmra.mrb[16].mxu1 %vm70_vm0, %v3224_v33 }
  0x85   :  { %2947 = vmatpush3.bf16.xpose.msk.msra.mxu0 %vm3076_vm1, %v2942_v22  ;;  %2995 = vmatpush3.bf16.xpose.msk.msra.mxu1 %vm3076_vm1, %v2942_v22 }
  0x86   :  { %2561 = vmatprep.mubr.msk.f32.mxu0 %vm70_vm0, %v3229_v34  ;;  %2617 = vmatprep.mubr.msk.f32.mxu1 %vm70_vm0, %v3234_v35 }
  0x87   :  { %2950 = vmatprep.subr.msk.bf16.mxu0 %vm3076_vm1, %v2948_v25  ;;  %2998 = vmatprep.subr.msk.bf16.mxu1 %vm3076_vm1, %v2948_v25 }
  0x88   :  { %2562 = vmatmul.mubr.msk.f32.gmra.mrb[18].mxu0 %vm70_vm0, %v3247_v37  ;;  %2618 = vmatmul.mubr.msk.f32.gmra.mrb[18].mxu1 %vm70_vm0, %v3252_v38 }
  0x89   :  { %2564 = vmatprep.mubr.msk.f32.mxu0 %vm70_vm0, %v3261_v39  ;;  %2620 = vmatprep.mubr.msk.f32.mxu1 %vm70_vm0, %v3266_v40 }
  0x8c   :  { %2565 = vmatmul.mubr.msk.f32.gmra.mrb[20].mxu0 %vm70_vm0, %v3289_v43  ;;  %2621 = vmatmul.mubr.msk.f32.gmra.mrb[20].mxu1 %vm70_vm0, %v3294_v44 }
  0x8d   :  { %2953 = vmatpush3.bf16.xpose.msk.msra.mxu0 %vm3076_vm1, %v2948_v25  ;;  %3001 = vmatpush3.bf16.xpose.msk.msra.mxu1 %vm3076_vm1, %v2948_v25  ;;  %v3872_v25 = vld [vmem:[%s4293_s2 + $0xa0] sm:$0xff] }
  0x8e   :  { %2567 = vmatprep.mubr.msk.f32.mxu0 %vm70_vm0, %v3299_v45  ;;  %2623 = vmatprep.mubr.msk.f32.mxu1 %vm70_vm0, %v3304_v46 }
  0x8f   :  { %2956 = vmatprep.subr.msk.bf16.mxu0 %vm3076_vm1, %v2954_v28  ;;  %3004 = vmatprep.subr.msk.bf16.mxu1 %vm3076_vm1, %v2954_v28 }
  0x90   :  { %2568 = vmatmul.mubr.msk.f32.gmra.mrb[22].mxu0 %vm70_vm0, %v3317_v48  ;;  %2624 = vmatmul.mubr.msk.f32.gmra.mrb[22].mxu1 %vm70_vm0, %v3322_v49 }
  0x91   :  { %2570 = vmatprep.mubr.msk.f32.mxu0 %vm70_vm0, %v3331_v50  ;;  %2626 = vmatprep.mubr.msk.f32.mxu1 %vm70_vm0, %v3336_v51 }
  0x94   :  { %2571 = vmatmul.mubr.msk.f32.gmra.mrb[24].mxu0 %vm70_vm0, %v3359_v54  ;;  %2627 = vmatmul.mubr.msk.f32.gmra.mrb[24].mxu1 %vm70_vm0, %v3364_v55 }
  0x95   :  { %2959 = vmatpush3.bf16.xpose.msk.msra.mxu0 %vm3076_vm1, %v2954_v28  ;;  %3007 = vmatpush3.bf16.xpose.msk.msra.mxu1 %vm3076_vm1, %v2954_v28 }
  0x96   :  { %2573 = vmatprep.mubr.msk.f32.mxu0 %vm70_vm0, %v3369_v56  ;;  %2629 = vmatprep.mubr.msk.f32.mxu1 %vm70_vm0, %v3374_v57 }
  0x97   :  { %2962 = vmatprep.subr.msk.bf16.mxu0 %vm3076_vm1, %v2960_v31  ;;  %3010 = vmatprep.subr.msk.bf16.mxu1 %vm3076_vm1, %v2960_v31 }
  0x98   :  { %2574 = vmatmul.mubr.msk.f32.gmra.mrb[26].mxu0 %vm70_vm0, %v3387_v59  ;;  %2630 = vmatmul.mubr.msk.f32.gmra.mrb[26].mxu1 %vm70_vm0, %v3392_v60 }
  0x99   :  { %2576 = vmatprep.mubr.msk.f32.mxu0 %vm70_vm0, %v3401_v61  ;;  %2632 = vmatprep.mubr.msk.f32.mxu1 %vm70_vm0, %v3406_v62 }
  0x9c   :  { %2577 = vmatmul.mubr.msk.f32.gmra.mrb[28].mxu0 %vm70_vm0, %v3429_v1  ;;  %2633 = vmatmul.mubr.msk.f32.gmra.mrb[28].mxu1 %vm70_vm0, %v3434_v3 }
  0x9d   :  { %2965 = vmatpush3.bf16.xpose.msk.msra.mxu0 %vm3076_vm1, %v2960_v31  ;;  %3013 = vmatpush3.bf16.xpose.msk.msra.mxu1 %vm3076_vm1, %v2960_v31 }
  0x9e   :  { %2579 = vmatprep.mubr.msk.f32.mxu0 %vm70_vm0, %v3439_v4  ;;  %2635 = vmatprep.mubr.msk.f32.mxu1 %vm70_vm0, %v3444_v5 }
  0x9f   :  { %2968 = vmatprep.subr.msk.bf16.mxu0 %vm3076_vm1, %v2966_v42  ;;  %3016 = vmatprep.subr.msk.bf16.mxu1 %vm3076_vm1, %v2966_v42 }
  0xa0   :  { %2580 = vmatmul.mubr.msk.f32.gmra.mrb[30].mxu0 %vm70_vm0, %v3457_v8  ;;  %2636 = vmatmul.mubr.msk.f32.gmra.mrb[30].mxu1 %vm70_vm0, %v3462_v9 }
  0xa1   :  { %2670 = vmatprep.mubr.msk.f32.mxu0 %vm70_vm0, %v3101_v7  ;;  %2726 = vmatprep.mubr.msk.f32.mxu1 %vm70_vm0, %v3114_v10  ;;  %v2154_v7 = vld [vmem:[%s4291_s0 + $0x160] sm:$0xff]  ;;  %v2155_v10 = vld [vmem:[%s4291_s0 + $0x168] sm:$0xff] }
  0xa2   :  { %v2978_v58 = vpack.c.bf16 %v2155_v10, %v2154_v7 }
  0xa5   :  { %2971 = vmatpush3.bf16.xpose.msk.msra.mxu0 %vm3076_vm1, %v2966_v42  ;;  %3019 = vmatpush3.bf16.xpose.msk.msra.mxu1 %vm3076_vm1, %v2966_v42 }
  0xa6   :  { %2974 = vmatprep.subr.msk.bf16.mxu0 %vm3076_vm1, %v2972_v53  ;;  %3022 = vmatprep.subr.msk.bf16.mxu1 %vm3076_vm1, %v2972_v53 }
  0xad   :  { %2977 = vmatpush3.bf16.xpose.msk.msra.mxu0 %vm3076_vm1, %v2972_v53  ;;  %3025 = vmatpush3.bf16.xpose.msk.msra.mxu1 %vm3076_vm1, %v2972_v53 }
  0xae   :  { %2980 = vmatprep.subr.msk.bf16.mxu0 %vm3076_vm1, %v2978_v58  ;;  %3028 = vmatprep.subr.msk.bf16.mxu1 %vm3076_vm1, %v2978_v58 }
  0xb5   :  { %2983 = vmatpush3.bf16.xpose.msk.msra.mxu0 %vm3076_vm1, %v2978_v58  ;;  %3031 = vmatpush3.bf16.xpose.msk.msra.mxu1 %vm3076_vm1, %v2978_v58 }
  0xb6   :  { %2986 = vmatprep.subr.msk.bf16.mxu0 %vm3076_vm1, %v2984_v6  ;;  %3034 = vmatprep.subr.msk.bf16.mxu1 %vm3076_vm1, %v2984_v6 }
  0xbd   :  { %2989 = vmatpush3.bf16.xpose.msk.msra.mxu0 %vm3076_vm1, %v2984_v6  ;;  %3037 = vmatpush3.bf16.xpose.msk.msra.mxu1 %vm3076_vm1, %v2984_v6 }
  0xc4   :  { %2671 = vmatmul.mubr.msk.f32.vlgmr.msra.gmra.mrb[32].mxu0 %vm70_vm0, %v3219_v32  ;;  %2727 = vmatmul.mubr.msk.f32.vlgmr.msra.gmra.mrb[32].mxu1 %vm70_vm0, %v3224_v33  ;;  %v3770_v32 = vld [vmem:[%s4293_s2 + $0x88] sm:$0xff]  ;;  %v3775_v33 = vld [vmem:[%s4293_s2] sm:$0xff] }
  0xc5   :  { %2673 = vmatprep.mubr.msk.f32.mxu0 %vm70_vm0, %v3229_v34  ;;  %2729 = vmatprep.mubr.msk.f32.mxu1 %vm70_vm0, %v3234_v35  ;;  %v3780_v34 = vld [vmem:[%s4293_s2 + $0x80] sm:$0xff] }
  0xc8   :  { %2674 = vmatmul.mubr.msk.f32.gmra.mrb[34].mxu0 %vm70_vm0, %v3247_v37  ;;  %2730 = vmatmul.mubr.msk.f32.gmra.mrb[34].mxu1 %vm70_vm0, %v3252_v38 }
  0xc9   :  { %2676 = vmatprep.mubr.msk.f32.mxu0 %vm70_vm0, %v3261_v39  ;;  %2732 = vmatprep.mubr.msk.f32.mxu1 %vm70_vm0, %v3266_v40  ;;  %v3786_v39 = vld [vmem:[%s4294_s3 + $0x8] sm:$0xff] }
  0xcc   :  { %2677 = vmatmul.mubr.msk.f32.gmra.mrb[36].mxu0 %vm70_vm0, %v3289_v43  ;;  %2733 = vmatmul.mubr.msk.f32.gmra.mrb[36].mxu1 %vm70_vm0, %v3294_v44  ;;  %v3792_v43 = vld [vmem:[%s4294_s3 + $0x88] sm:$0xff] }
  0xcd   :  { %2679 = vmatprep.mubr.msk.f32.mxu0 %vm70_vm0, %v3299_v45  ;;  %2735 = vmatprep.mubr.msk.f32.mxu1 %vm70_vm0, %v3304_v46 }
  0xd0   :  { %2680 = vmatmul.mubr.msk.f32.gmra.mrb[38].mxu0 %vm70_vm0, %v3317_v48  ;;  %2736 = vmatmul.mubr.msk.f32.gmra.mrb[38].mxu1 %vm70_vm0, %v3322_v49  ;;  %v3798_v48 = vld [vmem:[%s4294_s3] sm:$0xff] }
  0xd1   :  { %2682 = vmatprep.mubr.msk.f32.mxu0 %vm70_vm0, %v3331_v50  ;;  %2738 = vmatprep.mubr.msk.f32.mxu1 %vm70_vm0, %v3336_v51  ;;  %v3804_v50 = vld [vmem:[%s4293_s2 + $0x18] sm:$0xff] }
  0xd2   :  { %v3809_v51 = vld [vmem:[%s4293_s2 + $0x98] sm:$0xff] }
  0xd4   :  { %2683 = vmatmul.mubr.msk.f32.gmra.mrb[40].mxu0 %vm70_vm0, %v3359_v54  ;;  %2739 = vmatmul.mubr.msk.f32.gmra.mrb[40].mxu1 %vm70_vm0, %v3364_v55 }
  0xd5   :  { %2685 = vmatprep.mubr.msk.f32.mxu0 %vm70_vm0, %v3369_v56  ;;  %2741 = vmatprep.mubr.msk.f32.mxu1 %vm70_vm0, %v3374_v57  ;;  %v3814_v56 = vld [vmem:[%s4294_s3 + $0x80] sm:$0xff]  ;;  %v3819_v57 = vld [vmem:[%s4293_s2 + $0x10] sm:$0xff] }
  0xd8   :  { %2686 = vmatmul.mubr.msk.f32.gmra.mrb[42].mxu0 %vm70_vm0, %v3387_v59  ;;  %2742 = vmatmul.mubr.msk.f32.gmra.mrb[42].mxu1 %vm70_vm0, %v3392_v60  ;;  %v3824_v59 = vld [vmem:[%s4293_s2 + $0x90] sm:$0xff] }
  0xd9   :  { %2688 = vmatprep.mubr.msk.f32.mxu0 %vm70_vm0, %v3401_v61  ;;  %2744 = vmatprep.mubr.msk.f32.mxu1 %vm70_vm0, %v3406_v62 }
  0xdc   :  { %2689 = vmatmul.mubr.msk.f32.gmra.mrb[44].mxu0 %vm70_vm0, %v3429_v1  ;;  %2745 = vmatmul.mubr.msk.f32.gmra.mrb[44].mxu1 %vm70_vm0, %v3434_v3 }
  0xdd   :  { %2691 = vmatprep.mubr.msk.f32.mxu0 %vm70_vm0, %v3439_v4  ;;  %2747 = vmatprep.mubr.msk.f32.mxu1 %vm70_vm0, %v3444_v5 }
  0xe0   :  { %2692 = vmatmul.mubr.msk.f32.gmra.mrb[46].mxu0 %vm70_vm0, %v3457_v8  ;;  %2748 = vmatmul.mubr.msk.f32.gmra.mrb[46].mxu1 %vm70_vm0, %v3462_v9  ;;  %v3832_v8 = vld [vmem:[%s4294_s3 + $0x18] sm:$0xff] }
 0x117   :  { %v2448_v35 = vpop.f32.mrb[0].mxu0  ;;  %v2504_v37 = vpop.f32.mrb[0].mxu1 }
 0x118   :  { %v239_v38 = vadd.f32 %v2448_v35, %v3765_v2  ;;  %v534_v40 = vadd.f32 %v2504_v37, %v3770_v32  ;;  %v233_v44 = vpop.f32.mrb[1].mxu0  ;;  %v528_v45 = vpop.f32.mrb[1].mxu1  ;;  %v3895_v35 = vld [vmem:[%s4293_s2 + $0x38] sm:$0xff] }
 0x119   :  { %v234_v46 = vadd.f32 %v233_v44, %v3775_v33  ;;  %v529_v49 = vadd.f32 %v528_v45, %v3780_v34  ;;  %v3900_v37 = vld [vmem:[%s4293_s2 + $0xb8] sm:$0xff]  ;;  %v3905_v44 = vld [vmem:[%s4294_s3 + $0x20] sm:$0xff] }
 0x11a   :  { %v313_v54 = vmax.f32 %v239_v38, 0.0  ;;  %v608_v55 = vmax.f32 %v534_v40, 0.0  ;;  %v3910_v45 = vld [vmem:[%s4294_s3 + $0xa0] sm:$0xff] }
 0x11b   :  { %v312_v60 = vmax.f32 %v234_v46, 0.0  ;;  %v607_v61 = vmax.f32 %v529_v49, 0.0  ;;  %v2451_v62 = vpop.f32.mrb[2].mxu0  ;;  %v2507_v1 = vpop.f32.mrb[2].mxu1 }
 0x11c   :  { %v345_v3 = vmul.f32 %v3786_v39, %v313_v54  ;;  %v640_v4 = vmul.f32 %v3792_v43, %v608_v55  ;;  %v249_v5 = vadd.f32 %v2451_v62, %v3804_v50  ;;  %v544_v9 = vadd.f32 %v2507_v1, %v3809_v51  ;;  %v243_v12 = vpop.f32.mrb[3].mxu0  ;;  %v538_v13 = vpop.f32.mrb[3].mxu1  ;;  %v3915_v62 = vld [vmem:[%s4293_s2 + $0x30] sm:$0xff] }
 0x11d   :  { %v344_v14 = vmul.f32 %v3798_v48, %v312_v60  ;;  %v639_v15 = vmul.f32 %v3814_v56, %v607_v61  ;;  %v244_v16 = vadd.f32 %v243_v12, %v3819_v57  ;;  %v539_v18 = vadd.f32 %v538_v13, %v3824_v59  ;;  %4364 = vst [vmem:[#allocation5_spill] sm:$0xff] %v3915_v62  ;;  %v3920_v1 = vld [vmem:[%s4293_s2 + $0xb0] sm:$0xff] }
 0x11e   :  { %v315_v21 = vmax.f32 %v249_v5, 0.0  ;;  %v610_v22 = vmax.f32 %v544_v9, 0.0  ;;  %4365 = vst [vmem:[#allocation6_spill] sm:$0xff] %v3920_v1 }
 0x11f   :  { %v360_v26 = vadd.f32 %v345_v3, %v344_v14  ;;  %v655_v27 = vadd.f32 %v640_v4, %v639_v15  ;;  %v314_v28 = vmax.f32 %v244_v16, 0.0  ;;  %v609_v29 = vmax.f32 %v539_v18, 0.0  ;;  %v2454_v30 = vpop.f32.mrb[4].mxu0  ;;  %v2510_v31 = vpop.f32.mrb[4].mxu1 }
 0x120   :  { %v347_v36 = vmul.f32 %v3832_v8, %v315_v21  ;;  %v642_v41 = vmul.f32 %v3838_v11, %v610_v22  ;;  %v259_v42 = vadd.f32 %v2454_v30, %v3852_v19  ;;  %v554_v52 = vadd.f32 %v2510_v31, %v3857_v20  ;;  %v253_v53 = vpop.f32.mrb[5].mxu0  ;;  %v548_v7 = vpop.f32.mrb[5].mxu1  ;;  %v3931_v21 = vld [vmem:[%s4294_s3 + $0x38] sm:$0xff]  ;;  %v3948_v31 = vld [vmem:[%s4293_s2 + $0x48] sm:$0xff] }
 0x121   :  { %v346_v10 = vmul.f32 %v3846_v17, %v314_v28  ;;  %v641_v58 = vmul.f32 %v3862_v23, %v609_v29  ;;  %v254_v0 = vadd.f32 %v253_v53, %v3867_v24  ;;  %v549_v6 = vadd.f32 %v548_v7, %v3872_v25  ;;  %4366 = vst [vmem:[#allocation7_spill] sm:$0xff] %v3931_v21  ;;  %v3936_v22 = vld [vmem:[%s4294_s3 + $0xb8] sm:$0xff]  ;;  %v3942_v29 = vld [vmem:[%s4294_s3 + $0x30] sm:$0xff] }
 0x122   :  { %v317_v38 = vmax.f32 %v259_v42, 0.0  ;;  %v612_v40 = vmax.f32 %v554_v52, 0.0  ;;  %4367 = vst [vmem:[#allocation8_spill] sm:$0xff] %v3936_v22  ;;  %4368 = vst [vmem:[#allocation9_spill] sm:$0xff] %v3942_v29  ;;  %v3958_v52 = vld [vmem:[%s4294_s3 + $0xb0] sm:$0xff] }
 0x123   :  { %v361_v46 = vadd.f32 %v360_v26, %v346_v10  ;;  %v656_v49 = vadd.f32 %v655_v27, %v641_v58  ;;  %v316_v54 = vmax.f32 %v254_v0, 0.0  ;;  %v611_v55 = vmax.f32 %v549_v6, 0.0  ;;  %v2457_v60 = vpop.f32.mrb[6].mxu0  ;;  %v2513_v61 = vpop.f32.mrb[6].mxu1  ;;  %4369 = vst [vmem:[#allocation10_spill] sm:$0xff] %v3948_v31  ;;  %4371 = vst [vmem:[#allocation12_spill] sm:$0xff] %v3958_v52 }
 0x124   :  { %v349_v3 = vmul.f32 %v3880_v47, %v317_v38  ;;  %v644_v4 = vmul.f32 %v3888_v63, %v612_v40  ;;  %v269_v5 = vadd.f32 %v2457_v60, %v3895_v35  ;;  %v564_v9 = vadd.f32 %v2513_v61, %v3900_v37  ;;  %v263_v12 = vpop.f32.mrb[7].mxu0  ;;  %v558_v13 = vpop.f32.mrb[7].mxu1  ;;  %v3963_v10 = vld [vmem:[%s4293_s2 + $0x40] sm:$0xff]  ;;  %v3976_v61 = vld [vmem:[%s4294_s3 + $0x48] sm:$0xff] }
 0x125   :  { %v348_v14 = vmul.f32 %v3905_v44, %v316_v54  ;;  %v362_v15 = vadd.f32 %v361_v46, %v347_v36  ;;  %v643_v16 = vmul.f32 %v3910_v45, %v611_v55  ;;  %v657_v18 = vadd.f32 %v656_v49, %v642_v41  ;;  %v3953_v36 = vld [vmem:[%s4293_s2 + $0xc8] sm:$0xff]  ;;  %4372 = vst [vmem:[#allocation13_spill] sm:$0xff] %v3963_v10  ;;  %v3968_v58 = vld [vmem:[%s4293_s2 + $0xc0] sm:$0xff] }
 0x126   :  { %v319_v26 = vmax.f32 %v269_v5, 0.0  ;;  %v614_v27 = vmax.f32 %v564_v9, 0.0  ;;  %v264_v28 = vadd.f32 %v263_v12, %v3915_v62  ;;  %v559_v30 = vadd.f32 %v558_v13, %v3920_v1  ;;  %4370 = vst [vmem:[#allocation11_spill] sm:$0xff] %v3953_v36  ;;  %4373 = vst [vmem:[#allocation14_spill] sm:$0xff] %v3968_v58  ;;  %v3984_v13 = vld [vmem:[%s4294_s3 + $0xc8] sm:$0xff] }
 0x127   :  { %v363_v41 = vadd.f32 %v362_v15, %v348_v14  ;;  %v658_v42 = vadd.f32 %v657_v18, %v643_v16  ;;  %v2460_v53 = vpop.f32.mrb[8].mxu0  ;;  %v2516_v7 = vpop.f32.mrb[8].mxu1  ;;  %4374 = vst [vmem:[#allocation15_spill] sm:$0xff] %v3976_v61  ;;  %4375 = vst [vmem:[#allocation16_spill] sm:$0xff] %v3984_v13  ;;  %v3991_v14 = vld [vmem:[%s4293_s2 + $0x58] sm:$0xff] }
 0x128   :  { %v351_v0 = vmul.f32 %v3931_v21, %v319_v26  ;;  %v646_v6 = vmul.f32 %v3936_v22, %v614_v27  ;;  %v318_v38 = vmax.f32 %v264_v28, 0.0  ;;  %v613_v40 = vmax.f32 %v559_v30, 0.0  ;;  %v273_v46 = vpop.f32.mrb[9].mxu0  ;;  %v568_v49 = vpop.f32.mrb[9].mxu1  ;;  %4376 = vst [vmem:[#allocation17_spill] sm:$0xff] %v3991_v14  ;;  %v3996_v15 = vld [vmem:[%s4293_s2 + $0xd8] sm:$0xff] }
 0x129   :  { %v364_v54 = vadd.f32 %v363_v41, %v349_v3  ;;  %v659_v55 = vadd.f32 %v658_v42, %v644_v4  ;;  %v279_v60 = vadd.f32 %v2460_v53, %v3948_v31  ;;  %v574_v5 = vadd.f32 %v2516_v7, %v3953_v36  ;;  %4377 = vst [vmem:[#allocation18_spill] sm:$0xff] %v3996_v15  ;;  %v4001_v26 = vld [vmem:[%s4294_s3 + $0x40] sm:$0xff] }
 0x12a   :  { %v350_v9 = vmul.f32 %v3942_v29, %v318_v38  ;;  %v645_v12 = vmul.f32 %v3958_v52, %v613_v40  ;;  %v274_v3 = vadd.f32 %v273_v46, %v3963_v10  ;;  %v569_v4 = vadd.f32 %v568_v49, %v3968_v58  ;;  %4378 = vst [vmem:[#allocation19_spill] sm:$0xff] %v4001_v26  ;;  %v4006_v27 = vld [vmem:[%s4294_s3 + $0xc0] sm:$0xff]  ;;  %v4011_v40 = vld [vmem:[%s4293_s2 + $0x50] sm:$0xff] }
 0x12b   :  { %v321_v16 = vmax.f32 %v279_v60, 0.0  ;;  %v616_v18 = vmax.f32 %v574_v5, 0.0  ;;  %4379 = vst [vmem:[#allocation20_spill] sm:$0xff] %v4006_v27  ;;  %v2463_v28 = vpop.f32.mrb[10].mxu0  ;;  %v2519_v30 = vpop.f32.mrb[10].mxu1  ;;  %4380 = vst [vmem:[#allocation21_spill] sm:$0xff] %v4011_v40 }
 0x12c   :  { %v365_v41 = vadd.f32 %v364_v54, %v350_v9  ;;  %v660_v42 = vadd.f32 %v659_v55, %v645_v12  ;;  %v320_v53 = vmax.f32 %v274_v3, 0.0  ;;  %v615_v7 = vmax.f32 %v569_v4, 0.0  ;;  %v283_v38 = vpop.f32.mrb[11].mxu0  ;;  %v578_v46 = vpop.f32.mrb[11].mxu1  ;;  %v4016_v49 = vld [vmem:[%s4293_s2 + $0xd0] sm:$0xff]  ;;  %v4025_v9 = vld [vmem:[%s4293_s2 + $0x68] sm:$0xff] }
 0x12d   :  { %4381 = vst [vmem:[#allocation22_spill] sm:$0xff] %v4016_v49  ;;  %v353_v60 = vmul.f32 %v3976_v61, %v321_v16  ;;  %v648_v5 = vmul.f32 %v3984_v13, %v616_v18  ;;  %v289_v54 = vadd.f32 %v2463_v28, %v3991_v14  ;;  %v584_v55 = vadd.f32 %v2519_v30, %v3996_v15  ;;  %v4030_v12 = vld [vmem:[%s4293_s2 + $0xe8] sm:$0xff]  ;;  %v4037_v28 = vld [vmem:[%s4294_s3 + $0x58] sm:$0xff]  ;;  %v4097_v52 = vld [vmem:[%s4293_s2 + $0x70] sm:$0xff] }
 0x12e   :  { %4382 = vst [vmem:[#allocation23_spill] sm:$0xff] %v4025_v9  ;;  %4383 = vst [vmem:[#allocation24_spill] sm:$0xff] %v4030_v12  ;;  %v352_v3 = vmul.f32 %v4001_v26, %v320_v53  ;;  %v366_v4 = vadd.f32 %v365_v41, %v351_v0  ;;  %v647_v16 = vmul.f32 %v4006_v27, %v615_v7  ;;  %v4042_v30 = vld [vmem:[%s4294_s3 + $0xd8] sm:$0xff]  ;;  %v4048_v0 = vld [vmem:[%s4294_s3 + $0x50] sm:$0xff] }
 0x12f   :  { %v661_v18 = vadd.f32 %v660_v42, %v646_v6  ;;  %4384 = vst [vmem:[#allocation25_spill] sm:$0xff] %v4037_v28  ;;  %4385 = vst [vmem:[#allocation26_spill] sm:$0xff] %v4042_v30  ;;  %v323_v15 = vmax.f32 %v289_v54, 0.0  ;;  %v618_v14 = vmax.f32 %v584_v55, 0.0  ;;  %v284_v13 = vadd.f32 %v283_v38, %v4011_v40  ;;  %v4054_v41 = vld [vmem:[%s4294_s3 + $0xd0] sm:$0xff]  ;;  %v2466_v42 = vpop.f32.mrb[12].mxu0 }
 0x130   :  { %4386 = vst [vmem:[#allocation27_spill] sm:$0xff] %v4048_v0  ;;  %v579_v6 = vadd.f32 %v578_v46, %v4016_v49  ;;  %4387 = vst [vmem:[#allocation28_spill] sm:$0xff] %v4054_v41  ;;  %v2522_v53 = vpop.f32.mrb[12].mxu1  ;;  %v367_v7 = vadd.f32 %v366_v4, %v352_v3  ;;  %v299_v54 = vadd.f32 %v2466_v42, %v4025_v9  ;;  %v4060_v38 = vld [vmem:[%s4294_s3 + $0x68] sm:$0xff]  ;;  %v293_v40 = vpop.f32.mrb[13].mxu0  ;;  %v4066_v46 = vld [vmem:[%s4293_s2 + $0x60] sm:$0xff] }
 0x131   :  { %v662_v27 = vadd.f32 %v661_v18, %v647_v16  ;;  %4388 = vst [vmem:[#allocation29_spill] sm:$0xff] %v4060_v38  ;;  %v594_v55 = vadd.f32 %v2522_v53, %v4030_v12  ;;  %4389 = vst [vmem:[#allocation30_spill] sm:$0xff] %v4066_v46  ;;  %v588_v49 = vpop.f32.mrb[13].mxu1  ;;  %v4071_v3 = vld [vmem:[%s4293_s2 + $0xe0] sm:$0xff]  ;;  %v355_v4 = vmul.f32 %v4037_v28, %v323_v15  ;;  %v322_v18 = vmax.f32 %v284_v13, 0.0  ;;  %v4078_v53 = vld [vmem:[%s4294_s3 + $0xe8] sm:$0xff] }
 0x132   :  { %4390 = vst [vmem:[#allocation31_spill] sm:$0xff] %v4071_v3  ;;  %v650_v16 = vmul.f32 %v4042_v30, %v618_v14  ;;  %v617_v42 = vmax.f32 %v579_v6, 0.0  ;;  %4391 = vst [vmem:[#allocation32_spill] sm:$0xff] %v4078_v53  ;;  %v4083_v12 = vld [vmem:[%s4293_s2 + $0x78] sm:$0xff]  ;;  %v368_v15 = vadd.f32 %v367_v7, %v353_v60  ;;  %v325_v14 = vmax.f32 %v299_v54, 0.0 }
 0x133   :  { %4392 = vst [vmem:[#allocation33_spill] sm:$0xff] %v4083_v12  ;;  %v4088_v9 = vld [vmem:[%s4293_s2 + $0xf8] sm:$0xff]  ;;  %v663_v28 = vadd.f32 %v662_v27, %v648_v5  ;;  %v620_v13 = vmax.f32 %v594_v55, 0.0  ;;  %v354_v6 = vmul.f32 %v4048_v0, %v322_v18  ;;  %v294_v26 = vadd.f32 %v293_v40, %v4066_v46  ;;  %v2469_v58 = vpop.f32.mrb[14].mxu0  ;;  %v2525_v10 = vpop.f32.mrb[14].mxu1  ;;  %v4102_v27 = vld [vmem:[%s4293_s2 + $0xf0] sm:$0xff] }
 0x134   :  { %4393 = vst [vmem:[#allocation34_spill] sm:$0xff] %v4088_v9  ;;  %v649_v30 = vmul.f32 %v4054_v41, %v617_v42  ;;  %v589_v61 = vadd.f32 %v588_v49, %v4071_v3  ;;  %4394 = vst [vmem:[#allocation35_spill] sm:$0xff] %v4102_v27  ;;  %v357_v60 = vmul.f32 %v4060_v38, %v325_v14  ;;  %v4109_v40 = vld [vmem:[%s4294_s3 + $0x60] sm:$0xff]  ;;  %v303_v55 = vpop.f32.mrb[15].mxu0  ;;  %v598_v18 = vpop.f32.mrb[15].mxu1 }
 0x135   :  { %v652_v5 = vmul.f32 %v4078_v53, %v620_v13  ;;  %4395 = vst [vmem:[#allocation36_spill] sm:$0xff] %v4109_v40  ;;  %v4114_v49 = vld [vmem:[%s4294_s3 + $0xe0] sm:$0xff]  ;;  %v309_v7 = vadd.f32 %v2469_v58, %v4083_v12  ;;  %v604_v54 = vadd.f32 %v2525_v10, %v4088_v9  ;;  %v369_v42 = vadd.f32 %v368_v15, %v354_v6  ;;  %v4125_v10 = vld [vmem:[%s4294_s3 + $0x70] sm:$0xff] }
 0x136   :  { %4396 = vst [vmem:[#allocation37_spill] sm:$0xff] %v4114_v49  ;;  %v664_v14 = vadd.f32 %v663_v28, %v649_v30  ;;  %v324_v38 = vmax.f32 %v294_v26, 0.0  ;;  %v619_v13 = vmax.f32 %v589_v61, 0.0  ;;  %v304_v46 = vadd.f32 %v303_v55, %v4097_v52  ;;  %v4130_v61 = vld [vmem:[%s4294_s3 + $0xf0] sm:$0xff]  ;;  %v4135_v26 = vld [vmem:[%s4294_s3 + $0x78] sm:$0xff] }
 0x137   :  { %v327_v53 = vmax.f32 %v309_v7, 0.0  ;;  %v622_v3 = vmax.f32 %v604_v54, 0.0  ;;  %v599_v41 = vadd.f32 %v598_v18, %v4102_v27  ;;  %v370_v29 = vadd.f32 %v369_v42, %v355_v4  ;;  %4397 = vst [vmem:[#allocation38_spill] sm:$0xff] %v4130_v61  ;;  %v4140_v28 = vld [vmem:[%s4294_s3 + $0xf8] sm:$0xff] }
 0x138   :  { %v356_v0 = vmul.f32 %v4109_v40, %v324_v38  ;;  %v651_v36 = vmul.f32 %v4114_v49, %v619_v13  ;;  %v665_v58 = vadd.f32 %v664_v14, %v650_v16  ;;  %v326_v30 = vmax.f32 %v304_v46, 0.0 }
 0x139   :  { %v621_v38 = vmax.f32 %v599_v41, 0.0  ;;  %v359_v7 = vmul.f32 %v4135_v26, %v327_v53  ;;  %v654_v54 = vmul.f32 %v4140_v28, %v622_v3  ;;  %v4149_v3 = vstv %s4295_s4 }
 0x13a   :  { %v371_v4 = vadd.f32 %v370_v29, %v356_v0  ;;  %v666_v16 = vadd.f32 %v665_v58, %v651_v36  ;;  %v358_v15 = vmul.f32 %v4125_v10, %v326_v30 }
 0x13b   :  { %v653_v6 = vmul.f32 %v4130_v61, %v621_v38 }
 0x13c   :  { %v372_v55 = vadd.f32 %v371_v4, %v357_v60  ;;  %v667_v18 = vadd.f32 %v666_v16, %v652_v5 }
 0x13e   :  { %v373_v42 = vadd.f32 %v372_v55, %v358_v15  ;;  %v668_v14 = vadd.f32 %v667_v18, %v653_v6 }
 0x140   :  { %v374_v13 = vadd.f32 %v373_v42, %v359_v7  ;;  %v669_v49 = vadd.f32 %v668_v14, %v654_v54 }
 0x142   :  { %v375_v40 = vrot.slane %v374_v13, 4  ;;  %v670_v27 = vrot.slane %v669_v49, 4 }
 0x144   :  { %v376_v46 = vadd.f32 %v375_v40, %v374_v13  ;;  %v671_v41 = vadd.f32 %v670_v27, %v669_v49 }
 0x146   :  { %v377_v29 = vrot.slane %v376_v46, 2  ;;  %v672_v36 = vrot.slane %v671_v41, 2 }
 0x148   :  { %v378_v0 = vadd.f32 %v377_v29, %v376_v46  ;;  %v673_v58 = vadd.f32 %v672_v36, %v671_v41 }
 0x14a   :  { %v379_v30 = vrot.slane %v378_v0, 1  ;;  %v674_v38 = vrot.slane %v673_v58, 1 }
 0x14c   :  { %v380_v61 = vadd.f32 %v379_v30, %v378_v0  ;;  %v675_v53 = vadd.f32 %v674_v38, %v673_v58 }
 0x14e   :  { %v676_v60 = vadd.f32 %v675_v53, %v380_v61 }
 0x150   :  { %v678_v5 = vadd.f32 %v4149_v3, %v676_v60 }
 0x152   :  { %679 = vst [vmem:[%s4296_s5] sm:$0x1] %v678_v5 }
 0x157   :  { %v2560_v27 = vpop.f32.mrb[16].mxu0  ;;  %v2616_v40 = vpop.f32.mrb[16].mxu1 }
 0x158   :  { %v897_v49 = vadd.f32 %v2560_v27, %v3765_v2  ;;  %v1192_v4 = vadd.f32 %v2616_v40, %v3770_v32  ;;  %v891_v16 = vpop.f32.mrb[17].mxu0  ;;  %v1186_v15 = vpop.f32.mrb[17].mxu1 }
 0x159   :  { %v892_v6 = vadd.f32 %v891_v16, %v3775_v33  ;;  %v1187_v7 = vadd.f32 %v1186_v15, %v3780_v34 }
 0x15a   :  { %v971_v54 = vmax.f32 %v897_v49, 0.0  ;;  %v1266_v61 = vmax.f32 %v1192_v4, 0.0 }
 0x15b   :  { %v970_v55 = vmax.f32 %v892_v6, 0.0  ;;  %v1265_v18 = vmax.f32 %v1187_v7, 0.0  ;;  %v2563_v42 = vpop.f32.mrb[18].mxu0  ;;  %v2619_v14 = vpop.f32.mrb[18].mxu1 }
 0x15c   :  { %v1003_v13 = vmul.f32 %v971_v54, %v3786_v39  ;;  %v1298_v46 = vmul.f32 %v1266_v61, %v3792_v43  ;;  %v907_v41 = vadd.f32 %v2563_v42, %v3804_v50  ;;  %v1202_v29 = vadd.f32 %v2619_v14, %v3809_v51  ;;  %v901_v36 = vpop.f32.mrb[19].mxu0  ;;  %v1196_v0 = vpop.f32.mrb[19].mxu1 }
 0x15d   :  { %v1002_v58 = vmul.f32 %v970_v55, %v3798_v48  ;;  %v1297_v30 = vmul.f32 %v1265_v18, %v3814_v56  ;;  %v902_v38 = vadd.f32 %v901_v36, %v3819_v57  ;;  %v1197_v53 = vadd.f32 %v1196_v0, %v3824_v59 }
 0x15e   :  { %v973_v60 = vmax.f32 %v907_v41, 0.0  ;;  %v1268_v5 = vmax.f32 %v1202_v29, 0.0 }
 0x15f   :  { %v1018_v27 = vadd.f32 %v1003_v13, %v1002_v58  ;;  %v1313_v40 = vadd.f32 %v1298_v46, %v1297_v30  ;;  %v972_v49 = vmax.f32 %v902_v38, 0.0  ;;  %v1267_v4 = vmax.f32 %v1197_v53, 0.0  ;;  %v2566_v16 = vpop.f32.mrb[20].mxu0  ;;  %v2622_v15 = vpop.f32.mrb[20].mxu1 }
 0x160   :  { %v1005_v6 = vmul.f32 %v973_v60, %v3832_v8  ;;  %v1300_v7 = vmul.f32 %v1268_v5, %v3838_v11  ;;  %v917_v54 = vadd.f32 %v2566_v16, %v3852_v19  ;;  %v1212_v61 = vadd.f32 %v2622_v15, %v3857_v20  ;;  %v911_v55 = vpop.f32.mrb[21].mxu0  ;;  %v1206_v18 = vpop.f32.mrb[21].mxu1 }
 0x161   :  { %v1004_v42 = vmul.f32 %v972_v49, %v3846_v17  ;;  %v1299_v14 = vmul.f32 %v1267_v4, %v3862_v23  ;;  %v912_v13 = vadd.f32 %v911_v55, %v3867_v24  ;;  %v1207_v46 = vadd.f32 %v1206_v18, %v3872_v25 }
 0x162   :  { %v975_v41 = vmax.f32 %v917_v54, 0.0  ;;  %v1270_v29 = vmax.f32 %v1212_v61, 0.0 }
 0x163   :  { %v1019_v36 = vadd.f32 %v1018_v27, %v1004_v42  ;;  %v1314_v0 = vadd.f32 %v1313_v40, %v1299_v14  ;;  %v974_v58 = vmax.f32 %v912_v13, 0.0  ;;  %v1269_v30 = vmax.f32 %v1207_v46, 0.0  ;;  %v2569_v38 = vpop.f32.mrb[22].mxu0  ;;  %v2625_v53 = vpop.f32.mrb[22].mxu1 }
 0x164   :  { %v1007_v60 = vmul.f32 %v975_v41, %v3880_v47  ;;  %v1302_v5 = vmul.f32 %v1270_v29, %v3888_v63  ;;  %v927_v49 = vadd.f32 %v2569_v38, %v3895_v35  ;;  %v1222_v4 = vadd.f32 %v2625_v53, %v3900_v37  ;;  %v921_v16 = vpop.f32.mrb[23].mxu0  ;;  %v1216_v15 = vpop.f32.mrb[23].mxu1 }
 0x165   :  { %v1006_v55 = vmul.f32 %v974_v58, %v3905_v44  ;;  %v1020_v54 = vadd.f32 %v1019_v36, %v1005_v6  ;;  %v1301_v27 = vmul.f32 %v1269_v30, %v3910_v45  ;;  %v1315_v40 = vadd.f32 %v1314_v0, %v1300_v7 }
 0x166   :  { %v977_v61 = vmax.f32 %v927_v49, 0.0  ;;  %v1272_v18 = vmax.f32 %v1222_v4, 0.0  ;;  %v922_v42 = vadd.f32 %v921_v16, %v3915_v62  ;;  %v1217_v14 = vadd.f32 %v1216_v15, %v3920_v1  ;;  %v4398_v49 = vld [vmem:[#allocation11_spill] sm:$0xff]  ;;  %v4399_v16 = vld [vmem:[#allocation9_spill] sm:$0xff]  ;;  %v4402_v1 = vld [vmem:[#allocation14_spill] sm:$0xff] }
 0x167   :  { %v1021_v13 = vadd.f32 %v1020_v54, %v1006_v55  ;;  %v1316_v46 = vadd.f32 %v1315_v40, %v1301_v27  ;;  %v2572_v41 = vpop.f32.mrb[24].mxu0  ;;  %v2628_v29 = vpop.f32.mrb[24].mxu1  ;;  %v4400_v55 = vld [vmem:[#allocation12_spill] sm:$0xff]  ;;  %v4401_v27 = vld [vmem:[#allocation13_spill] sm:$0xff] }
 0x168   :  { %v1009_v38 = vmul.f32 %v977_v61, %v3931_v21  ;;  %v1304_v53 = vmul.f32 %v1272_v18, %v3936_v22  ;;  %v976_v63 = vmax.f32 %v922_v42, 0.0  ;;  %v1271_v58 = vmax.f32 %v1217_v14, 0.0  ;;  %v931_v6 = vpop.f32.mrb[25].mxu0  ;;  %v1226_v36 = vpop.f32.mrb[25].mxu1 }
 0x169   :  { %v1022_v30 = vadd.f32 %v1021_v13, %v1007_v60  ;;  %v1317_v7 = vadd.f32 %v1316_v46, %v1302_v5  ;;  %v937_v0 = vadd.f32 %v2572_v41, %v3948_v31  ;;  %v1232_v4 = vadd.f32 %v2628_v29, %v4398_v49  ;;  %v4403_v41 = vld [vmem:[#allocation15_spill] sm:$0xff]  ;;  %v4404_v49 = vld [vmem:[#allocation16_spill] sm:$0xff] }
 0x16a   :  { %v1008_v15 = vmul.f32 %v976_v63, %v4399_v16  ;;  %v1303_v54 = vmul.f32 %v1271_v58, %v4400_v55  ;;  %v932_v40 = vadd.f32 %v931_v6, %v4401_v27  ;;  %v1227_v61 = vadd.f32 %v1226_v36, %v4402_v1  ;;  %v4405_v16 = vld [vmem:[#allocation17_spill] sm:$0xff]  ;;  %v4406_v55 = vld [vmem:[#allocation18_spill] sm:$0xff]  ;;  %v4407_v27 = vld [vmem:[#allocation19_spill] sm:$0xff] }
 0x16b   :  { %v979_v21 = vmax.f32 %v937_v0, 0.0  ;;  %v1274_v18 = vmax.f32 %v1232_v4, 0.0  ;;  %v2575_v42 = vpop.f32.mrb[26].mxu0  ;;  %v2631_v14 = vpop.f32.mrb[26].mxu1  ;;  %v4408_v4 = vld [vmem:[#allocation20_spill] sm:$0xff] }
 0x16c   :  { %v1023_v22 = vadd.f32 %v1022_v30, %v1008_v15  ;;  %v1318_v62 = vadd.f32 %v1317_v7, %v1303_v54  ;;  %v978_v60 = vmax.f32 %v932_v40, 0.0  ;;  %v1273_v5 = vmax.f32 %v1227_v61, 0.0  ;;  %v941_v13 = vpop.f32.mrb[27].mxu0  ;;  %v1236_v46 = vpop.f32.mrb[27].mxu1  ;;  %v4409_v15 = vld [vmem:[#allocation21_spill] sm:$0xff]  ;;  %v4410_v40 = vld [vmem:[#allocation22_spill] sm:$0xff] }
 0x16d   :  { %v1011_v29 = vmul.f32 %v979_v21, %v4403_v41  ;;  %v1306_v63 = vmul.f32 %v1274_v18, %v4404_v49  ;;  %v947_v58 = vadd.f32 %v2575_v42, %v4405_v16  ;;  %v1242_v6 = vadd.f32 %v2631_v14, %v4406_v55  ;;  %v4411_v49 = vld [vmem:[#allocation23_spill] sm:$0xff]  ;;  %v4412_v16 = vld [vmem:[#allocation24_spill] sm:$0xff] }
 0x16e   :  { %v1010_v36 = vmul.f32 %v978_v60, %v4407_v27  ;;  %v1024_v0 = vadd.f32 %v1023_v22, %v1009_v38  ;;  %v1305_v1 = vmul.f32 %v1273_v5, %v4408_v4  ;;  %v1319_v31 = vadd.f32 %v1318_v62, %v1304_v53  ;;  %v4413_v22 = vld [vmem:[#allocation25_spill] sm:$0xff]  ;;  %v4414_v5 = vld [vmem:[#allocation26_spill] sm:$0xff] }
 0x16f   :  { %v981_v30 = vmax.f32 %v947_v58, 0.0  ;;  %v1276_v7 = vmax.f32 %v1242_v6, 0.0  ;;  %v942_v54 = vadd.f32 %v941_v13, %v4409_v15  ;;  %v1237_v61 = vadd.f32 %v1236_v46, %v4410_v40  ;;  %v2578_v47 = vpop.f32.mrb[28].mxu0  ;;  %v2634_v21 = vpop.f32.mrb[28].mxu1  ;;  %v4415_v40 = vld [vmem:[#allocation27_spill] sm:$0xff]  ;;  %v4419_v27 = vld [vmem:[#allocation29_spill] sm:$0xff] }
 0x170   :  { %v1025_v41 = vadd.f32 %v1024_v0, %v1010_v36  ;;  %v1320_v18 = vadd.f32 %v1319_v31, %v1305_v1  ;;  %v957_v42 = vadd.f32 %v2578_v47, %v4411_v49  ;;  %v1252_v14 = vadd.f32 %v2634_v21, %v4412_v16  ;;  %v951_v55 = vpop.f32.mrb[29].mxu0  ;;  %v1246_v60 = vpop.f32.mrb[29].mxu1  ;;  %v4416_v36 = vld [vmem:[#allocation28_spill] sm:$0xff]  ;;  %v4417_v31 = vld [vmem:[#allocation30_spill] sm:$0xff]  ;;  %v4418_v0 = vld [vmem:[#allocation31_spill] sm:$0xff] }
 0x171   :  { %v1013_v38 = vmul.f32 %v981_v30, %v4413_v22  ;;  %v1308_v62 = vmul.f32 %v1276_v7, %v4414_v5  ;;  %v980_v53 = vmax.f32 %v942_v54, 0.0  ;;  %v1275_v58 = vmax.f32 %v1237_v61, 0.0  ;;  %v4420_v22 = vld [vmem:[#allocation32_spill] sm:$0xff] }
 0x172   :  { %v1026_v6 = vadd.f32 %v1025_v41, %v1011_v29  ;;  %v1321_v13 = vadd.f32 %v1320_v18, %v1306_v63  ;;  %v983_v15 = vmax.f32 %v957_v42, 0.0  ;;  %v1278_v46 = vmax.f32 %v1252_v14, 0.0 }
 0x173   :  { %v1012_v4 = vmul.f32 %v980_v53, %v4415_v40  ;;  %v1307_v1 = vmul.f32 %v1275_v58, %v4416_v36  ;;  %v952_v47 = vadd.f32 %v951_v55, %v4417_v31  ;;  %v1247_v21 = vadd.f32 %v1246_v60, %v4418_v0  ;;  %v2581_v16 = vpop.f32.mrb[30].mxu0  ;;  %v2637_v49 = vpop.f32.mrb[30].mxu1  ;;  %v4421_v58 = vld [vmem:[#allocation35_spill] sm:$0xff]  ;;  %v4422_v31 = vld [vmem:[#allocation36_spill] sm:$0xff] }
 0x174   :  { %v1015_v30 = vmul.f32 %v983_v15, %v4419_v27  ;;  %v1310_v7 = vmul.f32 %v1278_v46, %v4420_v22  ;;  %v967_v54 = vadd.f32 %v2581_v16, %v4083_v12  ;;  %v1262_v41 = vadd.f32 %v2637_v49, %v4088_v9  ;;  %v961_v29 = vpop.f32.mrb[31].mxu0  ;;  %v1256_v63 = vpop.f32.mrb[31].mxu1  ;;  %v4423_v46 = vld [vmem:[#allocation37_spill] sm:$0xff] }
 0x175   :  { %v1027_v61 = vadd.f32 %v1026_v6, %v1012_v4  ;;  %v1322_v18 = vadd.f32 %v1321_v13, %v1307_v1  ;;  %v982_v42 = vmax.f32 %v952_v47, 0.0  ;;  %v1277_v14 = vmax.f32 %v1247_v21, 0.0  ;;  %v4424_v6 = vld [vmem:[#allocation38_spill] sm:$0xff] }
 0x176   :  { %v985_v53 = vmax.f32 %v967_v54, 0.0  ;;  %v1280_v55 = vmax.f32 %v1262_v41, 0.0  ;;  %v962_v60 = vadd.f32 %v961_v29, %v4097_v52  ;;  %v1257_v0 = vadd.f32 %v1256_v63, %v4421_v58 }
 0x177   :  { %v1014_v15 = vmul.f32 %v982_v42, %v4422_v31  ;;  %v1028_v27 = vadd.f32 %v1027_v61, %v1013_v38  ;;  %v1309_v22 = vmul.f32 %v1277_v14, %v4423_v46  ;;  %v1323_v16 = vadd.f32 %v1322_v18, %v1308_v62 }
 0x178   :  { %v984_v12 = vmax.f32 %v962_v60, 0.0  ;;  %v1279_v49 = vmax.f32 %v1257_v0, 0.0  ;;  %v1017_v1 = vmul.f32 %v985_v53, %v4135_v26  ;;  %v1312_v47 = vmul.f32 %v1280_v55, %v4140_v28 }
 0x179   :  { %v1029_v9 = vadd.f32 %v1028_v27, %v1014_v15  ;;  %v1324_v36 = vadd.f32 %v1323_v16, %v1309_v22 }
 0x17a   :  { %v1016_v4 = vmul.f32 %v984_v12, %v4125_v10  ;;  %v1311_v13 = vmul.f32 %v1279_v49, %v4424_v6 }
 0x17b   :  { %v1030_v21 = vadd.f32 %v1029_v9, %v1015_v30  ;;  %v1325_v54 = vadd.f32 %v1324_v36, %v1310_v7 }
 0x17d   :  { %v1031_v41 = vadd.f32 %v1030_v21, %v1016_v4  ;;  %v1326_v29 = vadd.f32 %v1325_v54, %v1311_v13 }
 0x17f   :  { %v1032_v38 = vadd.f32 %v1031_v41, %v1017_v1  ;;  %v1327_v63 = vadd.f32 %v1326_v29, %v1312_v47 }
 0x181   :  { %v1033_v61 = vrot.slane %v1032_v38, 4  ;;  %v1328_v62 = vrot.slane %v1327_v63, 4 }
 0x183   :  { %v1034_v18 = vadd.f32 %v1033_v61, %v1032_v38  ;;  %v1329_v0 = vadd.f32 %v1328_v62, %v1327_v63 }
 0x185   :  { %v1035_v27 = vrot.slane %v1034_v18, 2  ;;  %v1330_v22 = vrot.slane %v1329_v0, 2 }
 0x187   :  { %v1036_v42 = vadd.f32 %v1035_v27, %v1034_v18  ;;  %v1331_v12 = vadd.f32 %v1330_v22, %v1329_v0 }
 0x189   :  { %v1037_v14 = vrot.slane %v1036_v42, 1  ;;  %v1332_v60 = vrot.slane %v1331_v12, 1 }
 0x18b   :  { %v1038_v15 = vadd.f32 %v1037_v14, %v1036_v42  ;;  %v1333_v53 = vadd.f32 %v1332_v60, %v1331_v12 }
 0x18d   :  { %v1334_v16 = vadd.f32 %v1333_v53, %v1038_v15 }
 0x18f   :  { %v1335_v9 = vadd.f32 %v1334_v16, %v4149_v3 }
 0x191   :  { %1336 = vst [vmem:[%s4296_s5 + $0x1] sm:$0x1] %v1335_v9 }
 0x197   :  { %v2672_v36 = vpop.f32.mrb[32].mxu0  ;;  %v2728_v30 = vpop.f32.mrb[32].mxu1 }
 0x198   :  { %v1554_v7 = vadd.f32 %v2672_v36, %v3765_v2  ;;  %v1849_v55 = vadd.f32 %v2728_v30, %v3770_v32  ;;  %v1548_v49 = vpop.f32.mrb[33].mxu0  ;;  %v1843_v4 = vpop.f32.mrb[33].mxu1 }
 0x199   :  { %v1549_v13 = vadd.f32 %v1548_v49, %v3775_v33  ;;  %v1844_v1 = vadd.f32 %v1843_v4, %v3780_v34 }
 0x19a   :  { %v1628_v47 = vmax.f32 %v1554_v7, 0.0  ;;  %v1923_v21 = vmax.f32 %v1849_v55, 0.0 }
 0x19b   :  { %v1627_v54 = vmax.f32 %v1549_v13, 0.0  ;;  %v1922_v41 = vmax.f32 %v1844_v1, 0.0  ;;  %v2675_v29 = vpop.f32.mrb[34].mxu0  ;;  %v2731_v38 = vpop.f32.mrb[34].mxu1 }
 0x19c   :  { %v1660_v63 = vmul.f32 %v1628_v47, %v3786_v39  ;;  %v1955_v61 = vmul.f32 %v1923_v21, %v3792_v43  ;;  %v1564_v2 = vadd.f32 %v2675_v29, %v3804_v50  ;;  %v1859_v32 = vadd.f32 %v2731_v38, %v3809_v51  ;;  %v1558_v62 = vpop.f32.mrb[35].mxu0  ;;  %v1853_v18 = vpop.f32.mrb[35].mxu1  ;;  %v4425_v21 = vld [vmem:[#allocation3_spill] sm:$0xff]  ;;  %v4427_v38 = vld [vmem:[#allocation5_spill] sm:$0xff] }
 0x19d   :  { %v1659_v33 = vmul.f32 %v1627_v54, %v3798_v48  ;;  %v1954_v34 = vmul.f32 %v1922_v41, %v3814_v56  ;;  %v1559_v0 = vadd.f32 %v1558_v62, %v3819_v57  ;;  %v1854_v27 = vadd.f32 %v1853_v18, %v3824_v59  ;;  %v4426_v41 = vld [vmem:[#allocation4_spill] sm:$0xff] }
 0x19e   :  { %v1630_v22 = vmax.f32 %v1564_v2, 0.0  ;;  %v1925_v42 = vmax.f32 %v1859_v32, 0.0 }
 0x19f   :  { %v1675_v12 = vadd.f32 %v1660_v63, %v1659_v33  ;;  %v1970_v39 = vadd.f32 %v1955_v61, %v1954_v34  ;;  %v1629_v14 = vmax.f32 %v1559_v0, 0.0  ;;  %v1924_v43 = vmax.f32 %v1854_v27, 0.0  ;;  %v2678_v60 = vpop.f32.mrb[36].mxu0  ;;  %v2734_v50 = vpop.f32.mrb[36].mxu1  ;;  %v4428_v61 = vld [vmem:[#allocation6_spill] sm:$0xff] }
 0x1a0   :  { %v1574_v51 = vadd.f32 %v2678_v60, %v3852_v19  ;;  %v1869_v15 = vadd.f32 %v2734_v50, %v3857_v20  ;;  %v1568_v53 = vpop.f32.mrb[37].mxu0  ;;  %v1863_v48 = vpop.f32.mrb[37].mxu1  ;;  %v1662_v9 = vmul.f32 %v1630_v22, %v3832_v8  ;;  %v1957_v36 = vmul.f32 %v1925_v42, %v3838_v11  ;;  %v4429_v42 = vld [vmem:[#allocation10_spill] sm:$0xff]  ;;  %v4432_v50 = vld [vmem:[#allocation12_spill] sm:$0xff] }
 0x1a1   :  { %v1661_v56 = vmul.f32 %v1629_v14, %v3846_v17  ;;  %v1956_v57 = vmul.f32 %v1924_v43, %v3862_v23  ;;  %v1569_v59 = vadd.f32 %v1568_v53, %v3867_v24  ;;  %v1864_v16 = vadd.f32 %v1863_v48, %v3872_v25  ;;  %v4431_v43 = vld [vmem:[#allocation9_spill] sm:$0xff]  ;;  %v4434_v48 = vld [vmem:[#allocation14_spill] sm:$0xff] }
 0x1a2   :  { %v1632_v30 = vmax.f32 %v1574_v51, 0.0  ;;  %v1927_v7 = vmax.f32 %v1869_v15, 0.0  ;;  %v4433_v15 = vld [vmem:[#allocation13_spill] sm:$0xff] }
 0x1a3   :  { %v1676_v55 = vadd.f32 %v1675_v12, %v1661_v56  ;;  %v1971_v19 = vadd.f32 %v1970_v39, %v1956_v57  ;;  %v1631_v49 = vmax.f32 %v1569_v59, 0.0  ;;  %v1926_v20 = vmax.f32 %v1864_v16, 0.0  ;;  %v2681_v4 = vpop.f32.mrb[38].mxu0  ;;  %v2737_v13 = vpop.f32.mrb[38].mxu1  ;;  %v4430_v39 = vld [vmem:[#allocation11_spill] sm:$0xff]  ;;  %v4436_v16 = vld [vmem:[#allocation8_spill] sm:$0xff] }
 0x1a4   :  { %v1584_v17 = vadd.f32 %v2681_v4, %v3895_v35  ;;  %v1879_v23 = vadd.f32 %v2737_v13, %v3900_v37  ;;  %v1578_v1 = vpop.f32.mrb[39].mxu0  ;;  %v1873_v24 = vpop.f32.mrb[39].mxu1  ;;  %v1664_v54 = vmul.f32 %v1632_v30, %v4425_v21  ;;  %v1959_v29 = vmul.f32 %v1927_v7, %v4426_v41  ;;  %v4435_v57 = vld [vmem:[#allocation7_spill] sm:$0xff] }
 0x1a5   :  { %v1663_v25 = vmul.f32 %v1631_v49, %v3905_v44  ;;  %v1677_v47 = vadd.f32 %v1676_v55, %v1662_v9  ;;  %v1958_v8 = vmul.f32 %v1926_v20, %v3910_v45  ;;  %v1972_v11 = vadd.f32 %v1971_v19, %v1957_v36 }
 0x1a6   :  { %v1579_v63 = vadd.f32 %v1578_v1, %v4427_v38  ;;  %v1874_v2 = vadd.f32 %v1873_v24, %v4428_v61  ;;  %v1634_v62 = vmax.f32 %v1584_v17, 0.0  ;;  %v1929_v37 = vmax.f32 %v1879_v23, 0.0  ;;  %v4437_v23 = vld [vmem:[#allocation15_spill] sm:$0xff]  ;;  %v4438_v24 = vld [vmem:[#allocation16_spill] sm:$0xff] }
 0x1a7   :  { %v1678_v32 = vadd.f32 %v1677_v47, %v1663_v25  ;;  %v1973_v35 = vadd.f32 %v1972_v11, %v1958_v8  ;;  %v2684_v18 = vpop.f32.mrb[40].mxu0  ;;  %v2740_v33 = vpop.f32.mrb[40].mxu1  ;;  %v4439_v47 = vld [vmem:[#allocation17_spill] sm:$0xff]  ;;  %v4440_v11 = vld [vmem:[#allocation18_spill] sm:$0xff]  ;;  %v4442_v38 = vld [vmem:[#allocation20_spill] sm:$0xff] }
 0x1a8   :  { %v1633_v34 = vmax.f32 %v1579_v63, 0.0  ;;  %v1928_v44 = vmax.f32 %v1874_v2, 0.0  ;;  %v1588_v0 = vpop.f32.mrb[41].mxu0  ;;  %v1883_v27 = vpop.f32.mrb[41].mxu1  ;;  %v1594_v12 = vadd.f32 %v2684_v18, %v4429_v42  ;;  %v1889_v14 = vadd.f32 %v2740_v33, %v4430_v39 }
 0x1a9   :  { %v1679_v45 = vadd.f32 %v1678_v32, %v1664_v54  ;;  %v1974_v22 = vadd.f32 %v1973_v35, %v1959_v29  ;;  %v1589_v53 = vadd.f32 %v1588_v0, %v4433_v15  ;;  %v1884_v56 = vadd.f32 %v1883_v27, %v4434_v48  ;;  %v4441_v54 = vld [vmem:[#allocation19_spill] sm:$0xff]  ;;  %v4443_v35 = vld [vmem:[#allocation21_spill] sm:$0xff] }
 0x1aa   :  { %v1665_v60 = vmul.f32 %v1633_v34, %v4431_v43  ;;  %v1960_v51 = vmul.f32 %v1928_v44, %v4432_v50  ;;  %v1666_v59 = vmul.f32 %v1634_v62, %v4435_v57  ;;  %v1961_v9 = vmul.f32 %v1929_v37, %v4436_v16  ;;  %v4444_v37 = vld [vmem:[#allocation22_spill] sm:$0xff]  ;;  %v4445_v27 = vld [vmem:[#allocation23_spill] sm:$0xff] }
 0x1ab   :  { %v1636_v36 = vmax.f32 %v1594_v12, 0.0  ;;  %v1931_v30 = vmax.f32 %v1889_v14, 0.0  ;;  %v2687_v7 = vpop.f32.mrb[42].mxu0  ;;  %v2743_v55 = vpop.f32.mrb[42].mxu1  ;;  %v1635_v20 = vmax.f32 %v1589_v53, 0.0  ;;  %v1930_v4 = vmax.f32 %v1884_v56, 0.0 }
 0x1ac   :  { %v1680_v19 = vadd.f32 %v1679_v45, %v1665_v60  ;;  %v1975_v49 = vadd.f32 %v1974_v22, %v1960_v51  ;;  %v1598_v13 = vpop.f32.mrb[43].mxu0  ;;  %v1893_v17 = vpop.f32.mrb[43].mxu1  ;;  %v1604_v8 = vadd.f32 %v2687_v7, %v4439_v47  ;;  %v1899_v21 = vadd.f32 %v2743_v55, %v4440_v11  ;;  %v4446_v22 = vld [vmem:[#allocation24_spill] sm:$0xff]  ;;  %v4447_v60 = vld [vmem:[#allocation25_spill] sm:$0xff] }
 0x1ad   :  { %v1668_v1 = vmul.f32 %v1636_v36, %v4437_v23  ;;  %v1963_v25 = vmul.f32 %v1931_v30, %v4438_v24  ;;  %v1667_v41 = vmul.f32 %v1635_v20, %v4441_v54  ;;  %v1962_v63 = vmul.f32 %v1930_v4, %v4442_v38  ;;  %v4448_v56 = vld [vmem:[#allocation28_spill] sm:$0xff]  ;;  %v4452_v4 = vld [vmem:[#allocation34_spill] sm:$0xff] }
 0x1ae   :  { %v1681_v29 = vadd.f32 %v1680_v19, %v1666_v59  ;;  %v1976_v61 = vadd.f32 %v1975_v49, %v1961_v9  ;;  %v1638_v2 = vmax.f32 %v1604_v8, 0.0  ;;  %v1933_v32 = vmax.f32 %v1899_v21, 0.0  ;;  %v4449_v59 = vld [vmem:[#allocation30_spill] sm:$0xff]  ;;  %v4450_v9 = vld [vmem:[#allocation31_spill] sm:$0xff]  ;;  %v4451_v49 = vld [vmem:[#allocation33_spill] sm:$0xff] }
 0x1af   :  { %v1599_v62 = vadd.f32 %v1598_v13, %v4443_v35  ;;  %v1894_v18 = vadd.f32 %v1893_v17, %v4444_v37  ;;  %v2690_v33 = vpop.f32.mrb[44].mxu0  ;;  %v2746_v34 = vpop.f32.mrb[44].mxu1  ;;  %v4454_v38 = vld [vmem:[#allocation32_spill] sm:$0xff] }
 0x1b0   :  { %v1682_v44 = vadd.f32 %v1681_v29, %v1667_v41  ;;  %v1977_v0 = vadd.f32 %v1976_v61, %v1962_v63  ;;  %v1614_v45 = vadd.f32 %v2690_v33, %v4445_v27  ;;  %v1909_v42 = vadd.f32 %v2746_v34, %v4446_v22  ;;  %v1608_v12 = vpop.f32.mrb[45].mxu0  ;;  %v1903_v39 = vpop.f32.mrb[45].mxu1  ;;  %v4453_v41 = vld [vmem:[#allocation29_spill] sm:$0xff] }
 0x1b1   :  { %v1637_v14 = vmax.f32 %v1599_v62, 0.0  ;;  %v1932_v43 = vmax.f32 %v1894_v18, 0.0  ;;  %v1670_v50 = vmul.f32 %v1638_v2, %v4447_v60  ;;  %v1965_v51 = vmul.f32 %v1933_v32, %v4414_v5 }
 0x1b2   :  { %v1683_v15 = vadd.f32 %v1682_v44, %v1668_v1  ;;  %v1978_v53 = vadd.f32 %v1977_v0, %v1963_v25  ;;  %v1609_v16 = vadd.f32 %v1608_v12, %v4449_v59  ;;  %v1904_v36 = vadd.f32 %v1903_v39, %v4450_v9 }
 0x1b3   :  { %v1669_v48 = vmul.f32 %v1637_v14, %v4415_v40  ;;  %v1964_v57 = vmul.f32 %v1932_v43, %v4448_v56  ;;  %v2693_v30 = vpop.f32.mrb[46].mxu0  ;;  %v2749_v7 = vpop.f32.mrb[46].mxu1  ;;  %v1640_v55 = vmax.f32 %v1614_v45, 0.0  ;;  %v1935_v19 = vmax.f32 %v1909_v42, 0.0 }
 0x1b4   :  { %v1624_v20 = vadd.f32 %v2693_v30, %v4451_v49  ;;  %v1919_v13 = vadd.f32 %v2749_v7, %v4452_v4  ;;  %v1618_v17 = vpop.f32.mrb[47].mxu0  ;;  %v1913_v5 = vpop.f32.mrb[47].mxu1  ;;  %v1639_v24 = vmax.f32 %v1609_v16, 0.0  ;;  %v1934_v40 = vmax.f32 %v1904_v36, 0.0 }
 0x1b5   :  { %v1684_v23 = vadd.f32 %v1683_v15, %v1669_v48  ;;  %v1979_v1 = vadd.f32 %v1978_v53, %v1964_v57  ;;  %v1619_v25 = vadd.f32 %v1618_v17, %v4097_v52  ;;  %v1914_v47 = vadd.f32 %v1913_v5, %v4421_v58 }
 0x1b6   :  { %v1671_v8 = vmul.f32 %v1639_v24, %v4422_v31  ;;  %v1966_v21 = vmul.f32 %v1934_v40, %v4423_v46  ;;  %v1672_v29 = vmul.f32 %v1640_v55, %v4453_v41  ;;  %v1967_v63 = vmul.f32 %v1935_v19, %v4454_v38 }
 0x1b7   :  { %v1685_v11 = vadd.f32 %v1684_v23, %v1670_v50  ;;  %v1980_v54 = vadd.f32 %v1979_v1, %v1965_v51  ;;  %v1641_v61 = vmax.f32 %v1619_v25, 0.0  ;;  %v1936_v2 = vmax.f32 %v1914_v47, 0.0 }
 0x1b8   :  { %v1642_v62 = vmax.f32 %v1624_v20, 0.0  ;;  %v1937_v37 = vmax.f32 %v1919_v13, 0.0 }
 0x1b9   :  { %v1686_v32 = vadd.f32 %v1685_v11, %v1671_v8  ;;  %v1981_v35 = vadd.f32 %v1980_v54, %v1966_v21  ;;  %v1673_v52 = vmul.f32 %v1641_v61, %v4125_v10  ;;  %v1968_v58 = vmul.f32 %v1936_v2, %v4424_v6 }
 0x1ba   :  { %v1674_v33 = vmul.f32 %v1642_v62, %v4135_v26  ;;  %v1969_v46 = vmul.f32 %v1937_v37, %v4140_v28 }
 0x1bb   :  { %v1687_v18 = vadd.f32 %v1686_v32, %v1672_v29  ;;  %v1982_v31 = vadd.f32 %v1981_v35, %v1967_v63 }
 0x1bd   :  { %v1688_v34 = vadd.f32 %v1687_v18, %v1673_v52  ;;  %v1983_v44 = vadd.f32 %v1982_v31, %v1968_v58 }
 0x1bf   :  { %v1689_v0 = vadd.f32 %v1688_v34, %v1674_v33  ;;  %v1984_v27 = vadd.f32 %v1983_v44, %v1969_v46 }
 0x1c1   :  { %v1690_v45 = vrot.slane %v1689_v0, 4  ;;  %v1985_v22 = vrot.slane %v1984_v27, 4 }
 0x1c3   :  { %v1691_v42 = vadd.f32 %v1690_v45, %v1689_v0  ;;  %v1986_v12 = vadd.f32 %v1985_v22, %v1984_v27 }
 0x1c5   :  { %v1692_v39 = vrot.slane %v1691_v42, 2  ;;  %v1987_v14 = vrot.slane %v1986_v12, 2 }
 0x1c7   :  { %v1693_v43 = vadd.f32 %v1692_v39, %v1691_v42  ;;  %v1988_v10 = vadd.f32 %v1987_v14, %v1986_v12 }
 0x1c9   :  { %v1694_v60 = vrot.slane %v1693_v43, 1  ;;  %v1989_v6 = vrot.slane %v1988_v10, 1 }
 0x1cb   :  { %v1695_v50 = vadd.f32 %v1694_v60, %v1693_v43  ;;  %v1990_v51 = vadd.f32 %v1989_v6, %v1988_v10 }
 0x1cd   :  { %v1991_v15 = vadd.f32 %v1990_v51, %v1695_v50 }
 0x1cf   :  { %v1992_v26 = vadd.f32 %v1991_v15, %v4149_v3 }
 0x1d1   :  { %1993 = vst [vmem:[%s4296_s5 + $0x2] sm:$0x1] %v1992_v26 }

</bundles_post_ra>
